<compile_context>
chip_gen: v5e
topology: v5e:2x2
jax: 0.10.0
libtpu: 0.0.40
codegen_flags: <defaults>
</compile_context>

<pallas_src>
import jax
import jax.numpy as jnp
from jax import lax
from jax.experimental import pallas as pl
from jax.experimental.pallas import tpu as pltpu

SEQ_LEN = 10   # fixed by the module: x.unsqueeze(1).repeat(1, 10, 1)
LANES = 128    # TPU vreg lane width; gates are padded to this boundary


def _round_up(n, m):
    return ((n + m - 1) // m) * m


def gru_fc_sigmoid_kernel(x_ref, w_ih_ref, w_hh_ref, gi_bias_ref, b_hn_ref,
                          w_fc_ref, b_fc_ref, out_ref):
    """Whole GRU recurrence + fc + sigmoid for the full (small) batch in VMEM.

    Shapes (HP = hidden padded to 128 lanes):
      x:       (B, D)
      w_ih:    (D, 3*HP)   gates (r, z, n), each padded to HP columns
      w_hh:    (HP, 3*HP)
      gi_bias: (1, 3*HP)   = [b_ih_r + b_hh_r | b_ih_z + b_hh_z | b_ih_n]
      b_hn:    (1, HP)     = b_hh_n (must stay inside r*(...))
      w_fc:    (1, HP)
      b_fc:    (1,)        scalar, in SMEM
      out:     (B, 1)
    """
    x = x_ref[...]                                   # (B, D)
    w_hh = w_hh_ref[...]                             # (HP, 3*HP)
    B = x.shape[0]
    HP = w_hh.shape[0]

    # Input projection: identical at every timestep -> one fused matmul, once.
    # b_ih (all gates) and b_hh (r, z gates) are already folded into gi_bias.
    gi = jnp.dot(x, w_ih_ref[...], preferred_element_type=jnp.float32) \
        + gi_bias_ref[...]                           # (B, 3*HP)
    gi_r = gi[:, 0:HP]
    gi_z = gi[:, HP:2 * HP]
    gi_n = gi[:, 2 * HP:3 * HP]

    # Hoist the only remaining bias broadcast out of the unrolled loop.
    b_hn = jnp.broadcast_to(b_hn_ref[...], (B, HP))  # (B, HP)

    def step(_, h):
        # One fused lane-dense hidden matmul per step (vs. 3 unfused).
        gh = jnp.dot(h, w_hh, preferred_element_type=jnp.float32)   # (B, 3*HP)
        r = jax.nn.sigmoid(gi_r + gh[:, 0:HP])
        z = jax.nn.sigmoid(gi_z + gh[:, HP:2 * HP])
        n = jnp.tanh(gi_n + r * (gh[:, 2 * HP:3 * HP] + b_hn))
        # h' = (1-z)*n + z*h  ==  n + z*(h - n)   (one fewer VPU op per step)
        return n + z * (h - n)

    h0 = jnp.zeros((B, HP), jnp.float32)
    h = lax.fori_loop(0, SEQ_LEN, step, h0, unroll=True)

    # fc(hidden -> 1) + sigmoid, as a VPU multiply + row reduction (no N=1 MXU pass).
    logits = jnp.sum(h * w_fc_ref[...], axis=-1, keepdims=True) + b_fc_ref[0]
    out_ref[...] = jax.nn.sigmoid(logits)            # (B, 1)


def make_params(key, input_dim, hidden_dim):
    """Torch-layout params: uniform(-1/sqrt(H), 1/sqrt(H)), gates ordered (r, z, n)."""
    bound = 1.0 / jnp.sqrt(jnp.float32(hidden_dim))
    ks = jax.random.split(key, 7)
    u = lambda k, shape: jax.random.uniform(k, shape, jnp.float32, -bound, bound)
    return {
        "w_ih": u(ks[0], (3, input_dim, hidden_dim)),   # (gate, D, H)
        "w_hh": u(ks[1], (3, hidden_dim, hidden_dim)),  # (gate, H, H)
        "b_ih": u(ks[2], (3, 1, hidden_dim)),
        "b_hh": u(ks[3], (3, 1, hidden_dim)),
        "w_fc": u(ks[4], (hidden_dim, 1)),
        "b_fc": u(ks[5], (1, 1)),
    }


def pack_params(p):
    """Repack torch-layout params into the fused, 128-lane-padded kernel layout.

    Done once in the wrapper (outside the kernel); this is layout plumbing,
    not compute-hoisting.
    """
    _, D, H = p["w_ih"].shape
    HP = _round_up(H, LANES)

    def pad_cols(a):                      # (K, H) -> (K, HP), zero-padded lanes
        return jnp.pad(a, ((0, 0), (0, HP - H)))

    # Fused input-projection weight: (D, 3*HP)
    w_ih_cat = jnp.concatenate([pad_cols(p["w_ih"][g]) for g in range(3)], axis=1)

    # Fused hidden weight: (HP, 3*HP); pad both K rows and N cols of each gate.
    w_hh_cat = jnp.concatenate(
        [jnp.pad(p["w_hh"][g], ((0, HP - H), (0, HP - H))) for g in range(3)], axis=1)

    # Bias folding (exact): r/z gates get b_ih + b_hh folded into the input
    # projection; the n gate keeps only b_ih there (b_hh_n stays inside r*(...)).
    gi_bias = jnp.concatenate(
        [pad_cols(p["b_ih"][0] + p["b_hh"][0]),
         pad_cols(p["b_ih"][1] + p["b_hh"][1]),
         pad_cols(p["b_ih"][2])], axis=1)                         # (1, 3*HP)
    b_hn = pad_cols(p["b_hh"][2])                                 # (1, HP)

    w_fc_row = pad_cols(p["w_fc"].T)                              # (1, HP)
    b_fc = p["b_fc"].reshape((1,))                                # (1,) scalar

    return {"w_ih": w_ih_cat, "w_hh": w_hh_cat, "gi_bias": gi_bias,
            "b_hn": b_hn, "w_fc": w_fc_row, "b_fc": b_fc}


@jax.jit
def torch_gru_forward(x, packed):
    B, _ = x.shape
    out = pl.pallas_call(
        gru_fc_sigmoid_kernel,
        out_shape=jax.ShapeDtypeStruct((B, 1), jnp.float32),
        in_specs=[
            pl.BlockSpec(memory_space=pltpu.MemorySpace.VMEM),   # x
            pl.BlockSpec(memory_space=pltpu.MemorySpace.VMEM),   # w_ih (D, 3*HP)
            pl.BlockSpec(memory_space=pltpu.MemorySpace.VMEM),   # w_hh (HP, 3*HP)
            pl.BlockSpec(memory_space=pltpu.MemorySpace.VMEM),   # gi_bias
            pl.BlockSpec(memory_space=pltpu.MemorySpace.VMEM),   # b_hn
            pl.BlockSpec(memory_space=pltpu.MemorySpace.VMEM),   # w_fc
            pl.BlockSpec(memory_space=pltpu.MemorySpace.SMEM),   # b_fc scalar
        ],
        out_specs=pl.BlockSpec(memory_space=pltpu.MemorySpace.VMEM),
    )(x, packed["w_ih"], packed["w_hh"], packed["gi_bias"], packed["b_hn"],
      packed["w_fc"], packed["b_fc"])
    return out[:, 0]                      # .squeeze() -> (B,)


def reference_forward(x, params):
    """Pure-JAX reference mirroring the torch module literally (repeat to seq=10)."""
    B, _ = x.shape
    H = params["w_hh"].shape[-1]
    xs = jnp.repeat(x[:, None, :], SEQ_LEN, axis=1)   # (B, 10, D)

    def step(t, h):
        xt = xs[:, t, :]
        gi = [xt @ params["w_ih"][g] + params["b_ih"][g] for g in range(3)]
        gh = [h @ params["w_hh"][g] + params["b_hh"][g] for g in range(3)]
        r = jax.nn.sigmoid(gi[0] + gh[0])
        z = jax.nn.sigmoid(gi[1] + gh[1])
        n = jnp.tanh(gi[2] + r * gh[2])
        return (1.0 - z) * n + z * h

    h = lax.fori_loop(0, SEQ_LEN, step, jnp.zeros((B, H), jnp.float32))
    return jax.nn.sigmoid(h @ params["w_fc"] + params["b_fc"])[:, 0]


if __name__ == "__main__":
    batch, input_dim, hidden_dim = 8, 16, 64   # hidden_dim = module default
    key = jax.random.PRNGKey(0)
    k_x, k_p = jax.random.split(key)
    x = jax.random.normal(k_x, (batch, input_dim), jnp.float32)
    params = make_params(k_p, input_dim, hidden_dim)
    packed = jax.tree_util.tree_map(jax.block_until_ready, pack_params(params))

    out = jax.block_until_ready(torch_gru_forward(x, packed))
    ref = jax.block_until_ready(reference_forward(x, params))

    assert out.shape == (batch,), out.shape
    assert jnp.allclose(out, ref, atol=1e-5, rtol=1e-5), (out, ref)
    print("KERNEL_OK")
</pallas_src>

<mosaic_0001>
module attributes {stable_mosaic.version = 11 : i64} {
  func.func @gru_fc_sigmoid_kernel(%arg0: memref<8x16xf32, #tpu.memory_space<vmem>>, %arg1: memref<16x384xf32, #tpu.memory_space<vmem>>, %arg2: memref<128x384xf32, #tpu.memory_space<vmem>>, %arg3: memref<1x384xf32, #tpu.memory_space<vmem>>, %arg4: memref<1x128xf32, #tpu.memory_space<vmem>>, %arg5: memref<1x128xf32, #tpu.memory_space<vmem>>, %arg6: memref<1xf32, #tpu.memory_space<smem>>, %arg7: memref<8x1xf32, #tpu.memory_space<vmem>>) attributes {dimension_semantics = [], scalar_prefetch = 0 : i64, scratch_operands = 0 : i64, tpu.core_type = #tpu.core_type<tc>} {
    %c0 = arith.constant 0 : index
    %c0_0 = arith.constant 0 : index
    %0 = vector.load %arg0[%c0, %c0_0] : memref<8x16xf32, #tpu.memory_space<vmem>>, vector<8x16xf32>
    %c0_1 = arith.constant 0 : index
    %c0_2 = arith.constant 0 : index
    %1 = vector.load %arg2[%c0_1, %c0_2] : memref<128x384xf32, #tpu.memory_space<vmem>>, vector<128x384xf32>
    %c0_3 = arith.constant 0 : index
    %c0_4 = arith.constant 0 : index
    %2 = vector.load %arg1[%c0_3, %c0_4] : memref<16x384xf32, #tpu.memory_space<vmem>>, vector<16x384xf32>
    %cst = arith.constant dense<0.000000e+00> : vector<8x384xf32>
    %3 = tpu.matmul %0, %2, %cst {dimension_numbers = #tpu.dot_dimension_numbers<[1], [0], [0], [1], [0, 0, 1, 1], [], []>} : vector<8x16xf32>, vector<16x384xf32>, vector<8x384xf32> -> vector<8x384xf32>
    %c0_5 = arith.constant 0 : index
    %c0_6 = arith.constant 0 : index
    %4 = vector.load %arg3[%c0_5, %c0_6] : memref<1x384xf32, #tpu.memory_space<vmem>>, vector<1x384xf32>
    %5 = vector.broadcast %4 : vector<1x384xf32> to vector<8x384xf32>
    %6 = arith.addf %3, %5 : vector<8x384xf32>
    %7 = vector.extract_strided_slice %6 {offsets = [0, 0], sizes = [8, 128], strides = [1, 1]} : vector<8x384xf32> to vector<8x128xf32>
    %8 = vector.extract_strided_slice %6 {offsets = [0, 128], sizes = [8, 128], strides = [1, 1]} : vector<8x384xf32> to vector<8x128xf32>
    %9 = vector.extract_strided_slice %6 {offsets = [0, 256], sizes = [8, 128], strides = [1, 1]} : vector<8x384xf32> to vector<8x128xf32>
    %c0_7 = arith.constant 0 : index
    %c0_8 = arith.constant 0 : index
    %10 = vector.load %arg4[%c0_7, %c0_8] : memref<1x128xf32, #tpu.memory_space<vmem>>, vector<1x128xf32>
    %11 = vector.shape_cast %10 : vector<1x128xf32> to vector<1x128xf32>
    %12 = vector.broadcast %11 : vector<1x128xf32> to vector<8x128xf32>
    %cst_9 = arith.constant 0.000000e+00 : f32
    %13 = vector.broadcast %cst_9 : f32 to vector<8x128xf32>
    %c0_i32 = arith.constant 0 : i32
    %cst_10 = arith.constant dense<0.000000e+00> : vector<8x384xf32>
    %14 = tpu.matmul %13, %1, %cst_10 {dimension_numbers = #tpu.dot_dimension_numbers<[1], [0], [0], [1], [0, 0, 1, 1], [], []>} : vector<8x128xf32>, vector<128x384xf32>, vector<8x384xf32> -> vector<8x384xf32>
    %15 = vector.extract_strided_slice %14 {offsets = [0, 0], sizes = [8, 128], strides = [1, 1]} : vector<8x384xf32> to vector<8x128xf32>
    %16 = arith.addf %7, %15 : vector<8x128xf32>
    %17 = arith.negf %16 : vector<8x128xf32>
    %18 = math.exp %17 : vector<8x128xf32>
    %cst_11 = arith.constant 1.000000e+00 : f32
    %19 = vector.broadcast %cst_11 : f32 to vector<8x128xf32>
    %20 = arith.addf %19, %18 : vector<8x128xf32>
    %21 = arith.divf %19, %20 : vector<8x128xf32>
    %22 = vector.extract_strided_slice %14 {offsets = [0, 128], sizes = [8, 128], strides = [1, 1]} : vector<8x384xf32> to vector<8x128xf32>
    %23 = arith.addf %8, %22 : vector<8x128xf32>
    %24 = arith.negf %23 : vector<8x128xf32>
    %25 = math.exp %24 : vector<8x128xf32>
    %cst_12 = arith.constant 1.000000e+00 : f32
    %26 = vector.broadcast %cst_12 : f32 to vector<8x128xf32>
    %27 = arith.addf %26, %25 : vector<8x128xf32>
    %28 = arith.divf %26, %27 : vector<8x128xf32>
    %29 = vector.extract_strided_slice %14 {offsets = [0, 256], sizes = [8, 128], strides = [1, 1]} : vector<8x384xf32> to vector<8x128xf32>
    %30 = arith.addf %29, %12 : vector<8x128xf32>
    %31 = arith.mulf %21, %30 : vector<8x128xf32>
    %32 = arith.addf %9, %31 : vector<8x128xf32>
    %33 = math.tanh %32 : vector<8x128xf32>
    %34 = arith.subf %13, %33 : vector<8x128xf32>
    %35 = arith.mulf %28, %34 : vector<8x128xf32>
    %36 = arith.addf %33, %35 : vector<8x128xf32>
    %c1_i32 = arith.constant 1 : i32
    %cst_13 = arith.constant dense<0.000000e+00> : vector<8x384xf32>
    %37 = tpu.matmul %36, %1, %cst_13 {dimension_numbers = #tpu.dot_dimension_numbers<[1], [0], [0], [1], [0, 0, 1, 1], [], []>} : vector<8x128xf32>, vector<128x384xf32>, vector<8x384xf32> -> vector<8x384xf32>
    %38 = vector.extract_strided_slice %37 {offsets = [0, 0], sizes = [8, 128], strides = [1, 1]} : vector<8x384xf32> to vector<8x128xf32>
    %39 = arith.addf %7, %38 : vector<8x128xf32>
    %40 = arith.negf %39 : vector<8x128xf32>
    %41 = math.exp %40 : vector<8x128xf32>
    %cst_14 = arith.constant 1.000000e+00 : f32
    %42 = vector.broadcast %cst_14 : f32 to vector<8x128xf32>
    %43 = arith.addf %42, %41 : vector<8x128xf32>
    %44 = arith.divf %42, %43 : vector<8x128xf32>
    %45 = vector.extract_strided_slice %37 {offsets = [0, 128], sizes = [8, 128], strides = [1, 1]} : vector<8x384xf32> to vector<8x128xf32>
    %46 = arith.addf %8, %45 : vector<8x128xf32>
    %47 = arith.negf %46 : vector<8x128xf32>
    %48 = math.exp %47 : vector<8x128xf32>
    %cst_15 = arith.constant 1.000000e+00 : f32
    %49 = vector.broadcast %cst_15 : f32 to vector<8x128xf32>
    %50 = arith.addf %49, %48 : vector<8x128xf32>
    %51 = arith.divf %49, %50 : vector<8x128xf32>
    %52 = vector.extract_strided_slice %37 {offsets = [0, 256], sizes = [8, 128], strides = [1, 1]} : vector<8x384xf32> to vector<8x128xf32>
    %53 = arith.addf %52, %12 : vector<8x128xf32>
    %54 = arith.mulf %44, %53 : vector<8x128xf32>
    %55 = arith.addf %9, %54 : vector<8x128xf32>
    %56 = math.tanh %55 : vector<8x128xf32>
    %57 = arith.subf %36, %56 : vector<8x128xf32>
    %58 = arith.mulf %51, %57 : vector<8x128xf32>
    %59 = arith.addf %56, %58 : vector<8x128xf32>
    %c2_i32 = arith.constant 2 : i32
    %cst_16 = arith.constant dense<0.000000e+00> : vector<8x384xf32>
    %60 = tpu.matmul %59, %1, %cst_16 {dimension_numbers = #tpu.dot_dimension_numbers<[1], [0], [0], [1], [0, 0, 1, 1], [], []>} : vector<8x128xf32>, vector<128x384xf32>, vector<8x384xf32> -> vector<8x384xf32>
    %61 = vector.extract_strided_slice %60 {offsets = [0, 0], sizes = [8, 128], strides = [1, 1]} : vector<8x384xf32> to vector<8x128xf32>
    %62 = arith.addf %7, %61 : vector<8x128xf32>
    %63 = arith.negf %62 : vector<8x128xf32>
    %64 = math.exp %63 : vector<8x128xf32>
    %cst_17 = arith.constant 1.000000e+00 : f32
    %65 = vector.broadcast %cst_17 : f32 to vector<8x128xf32>
    %66 = arith.addf %65, %64 : vector<8x128xf32>
    %67 = arith.divf %65, %66 : vector<8x128xf32>
    %68 = vector.extract_strided_slice %60 {offsets = [0, 128], sizes = [8, 128], strides = [1, 1]} : vector<8x384xf32> to vector<8x128xf32>
    %69 = arith.addf %8, %68 : vector<8x128xf32>
    %70 = arith.negf %69 : vector<8x128xf32>
    %71 = math.exp %70 : vector<8x128xf32>
    %cst_18 = arith.constant 1.000000e+00 : f32
    %72 = vector.broadcast %cst_18 : f32 to vector<8x128xf32>
    %73 = arith.addf %72, %71 : vector<8x128xf32>
    %74 = arith.divf %72, %73 : vector<8x128xf32>
    %75 = vector.extract_strided_slice %60 {offsets = [0, 256], sizes = [8, 128], strides = [1, 1]} : vector<8x384xf32> to vector<8x128xf32>
    %76 = arith.addf %75, %12 : vector<8x128xf32>
    %77 = arith.mulf %67, %76 : vector<8x128xf32>
    %78 = arith.addf %9, %77 : vector<8x128xf32>
    %79 = math.tanh %78 : vector<8x128xf32>
    %80 = arith.subf %59, %79 : vector<8x128xf32>
    %81 = arith.mulf %74, %80 : vector<8x128xf32>
    %82 = arith.addf %79, %81 : vector<8x128xf32>
    %c3_i32 = arith.constant 3 : i32
    %cst_19 = arith.constant dense<0.000000e+00> : vector<8x384xf32>
    %83 = tpu.matmul %82, %1, %cst_19 {dimension_numbers = #tpu.dot_dimension_numbers<[1], [0], [0], [1], [0, 0, 1, 1], [], []>} : vector<8x128xf32>, vector<128x384xf32>, vector<8x384xf32> -> vector<8x384xf32>
    %84 = vector.extract_strided_slice %83 {offsets = [0, 0], sizes = [8, 128], strides = [1, 1]} : vector<8x384xf32> to vector<8x128xf32>
    %85 = arith.addf %7, %84 : vector<8x128xf32>
    %86 = arith.negf %85 : vector<8x128xf32>
    %87 = math.exp %86 : vector<8x128xf32>
    %cst_20 = arith.constant 1.000000e+00 : f32
    %88 = vector.broadcast %cst_20 : f32 to vector<8x128xf32>
    %89 = arith.addf %88, %87 : vector<8x128xf32>
    %90 = arith.divf %88, %89 : vector<8x128xf32>
    %91 = vector.extract_strided_slice %83 {offsets = [0, 128], sizes = [8, 128], strides = [1, 1]} : vector<8x384xf32> to vector<8x128xf32>
    %92 = arith.addf %8, %91 : vector<8x128xf32>
    %93 = arith.negf %92 : vector<8x128xf32>
    %94 = math.exp %93 : vector<8x128xf32>
    %cst_21 = arith.constant 1.000000e+00 : f32
    %95 = vector.broadcast %cst_21 : f32 to vector<8x128xf32>
    %96 = arith.addf %95, %94 : vector<8x128xf32>
    %97 = arith.divf %95, %96 : vector<8x128xf32>
    %98 = vector.extract_strided_slice %83 {offsets = [0, 256], sizes = [8, 128], strides = [1, 1]} : vector<8x384xf32> to vector<8x128xf32>
    %99 = arith.addf %98, %12 : vector<8x128xf32>
    %100 = arith.mulf %90, %99 : vector<8x128xf32>
    %101 = arith.addf %9, %100 : vector<8x128xf32>
    %102 = math.tanh %101 : vector<8x128xf32>
    %103 = arith.subf %82, %102 : vector<8x128xf32>
    %104 = arith.mulf %97, %103 : vector<8x128xf32>
    %105 = arith.addf %102, %104 : vector<8x128xf32>
    %c4_i32 = arith.constant 4 : i32
    %cst_22 = arith.constant dense<0.000000e+00> : vector<8x384xf32>
    %106 = tpu.matmul %105, %1, %cst_22 {dimension_numbers = #tpu.dot_dimension_numbers<[1], [0], [0], [1], [0, 0, 1, 1], [], []>} : vector<8x128xf32>, vector<128x384xf32>, vector<8x384xf32> -> vector<8x384xf32>
    %107 = vector.extract_strided_slice %106 {offsets = [0, 0], sizes = [8, 128], strides = [1, 1]} : vector<8x384xf32> to vector<8x128xf32>
    %108 = arith.addf %7, %107 : vector<8x128xf32>
    %109 = arith.negf %108 : vector<8x128xf32>
    %110 = math.exp %109 : vector<8x128xf32>
    %cst_23 = arith.constant 1.000000e+00 : f32
    %111 = vector.broadcast %cst_23 : f32 to vector<8x128xf32>
    %112 = arith.addf %111, %110 : vector<8x128xf32>
    %113 = arith.divf %111, %112 : vector<8x128xf32>
    %114 = vector.extract_strided_slice %106 {offsets = [0, 128], sizes = [8, 128], strides = [1, 1]} : vector<8x384xf32> to vector<8x128xf32>
    %115 = arith.addf %8, %114 : vector<8x128xf32>
    %116 = arith.negf %115 : vector<8x128xf32>
    %117 = math.exp %116 : vector<8x128xf32>
    %cst_24 = arith.constant 1.000000e+00 : f32
    %118 = vector.broadcast %cst_24 : f32 to vector<8x128xf32>
    %119 = arith.addf %118, %117 : vector<8x128xf32>
    %120 = arith.divf %118, %119 : vector<8x128xf32>
    %121 = vector.extract_strided_slice %106 {offsets = [0, 256], sizes = [8, 128], strides = [1, 1]} : vector<8x384xf32> to vector<8x128xf32>
    %122 = arith.addf %121, %12 : vector<8x128xf32>
    %123 = arith.mulf %113, %122 : vector<8x128xf32>
    %124 = arith.addf %9, %123 : vector<8x128xf32>
    %125 = math.tanh %124 : vector<8x128xf32>
    %126 = arith.subf %105, %125 : vector<8x128xf32>
    %127 = arith.mulf %120, %126 : vector<8x128xf32>
    %128 = arith.addf %125, %127 : vector<8x128xf32>
    %c5_i32 = arith.constant 5 : i32
    %cst_25 = arith.constant dense<0.000000e+00> : vector<8x384xf32>
    %129 = tpu.matmul %128, %1, %cst_25 {dimension_numbers = #tpu.dot_dimension_numbers<[1], [0], [0], [1], [0, 0, 1, 1], [], []>} : vector<8x128xf32>, vector<128x384xf32>, vector<8x384xf32> -> vector<8x384xf32>
    %130 = vector.extract_strided_slice %129 {offsets = [0, 0], sizes = [8, 128], strides = [1, 1]} : vector<8x384xf32> to vector<8x128xf32>
    %131 = arith.addf %7, %130 : vector<8x128xf32>
    %132 = arith.negf %131 : vector<8x128xf32>
    %133 = math.exp %132 : vector<8x128xf32>
    %cst_26 = arith.constant 1.000000e+00 : f32
    %134 = vector.broadcast %cst_26 : f32 to vector<8x128xf32>
    %135 = arith.addf %134, %133 : vector<8x128xf32>
    %136 = arith.divf %134, %135 : vector<8x128xf32>
    %137 = vector.extract_strided_slice %129 {offsets = [0, 128], sizes = [8, 128], strides = [1, 1]} : vector<8x384xf32> to vector<8x128xf32>
    %138 = arith.addf %8, %137 : vector<8x128xf32>
    %139 = arith.negf %138 : vector<8x128xf32>
    %140 = math.exp %139 : vector<8x128xf32>
    %cst_27 = arith.constant 1.000000e+00 : f32
    %141 = vector.broadcast %cst_27 : f32 to vector<8x128xf32>
    %142 = arith.addf %141, %140 : vector<8x128xf32>
    %143 = arith.divf %141, %142 : vector<8x128xf32>
    %144 = vector.extract_strided_slice %129 {offsets = [0, 256], sizes = [8, 128], strides = [1, 1]} : vector<8x384xf32> to vector<8x128xf32>
    %145 = arith.addf %144, %12 : vector<8x128xf32>
    %146 = arith.mulf %136, %145 : vector<8x128xf32>
    %147 = arith.addf %9, %146 : vector<8x128xf32>
    %148 = math.tanh %147 : vector<8x128xf32>
    %149 = arith.subf %128, %148 : vector<8x128xf32>
    %150 = arith.mulf %143, %149 : vector<8x128xf32>
    %151 = arith.addf %148, %150 : vector<8x128xf32>
    %c6_i32 = arith.constant 6 : i32
    %cst_28 = arith.constant dense<0.000000e+00> : vector<8x384xf32>
    %152 = tpu.matmul %151, %1, %cst_28 {dimension_numbers = #tpu.dot_dimension_numbers<[1], [0], [0], [1], [0, 0, 1, 1], [], []>} : vector<8x128xf32>, vector<128x384xf32>, vector<8x384xf32> -> vector<8x384xf32>
    %153 = vector.extract_strided_slice %152 {offsets = [0, 0], sizes = [8, 128], strides = [1, 1]} : vector<8x384xf32> to vector<8x128xf32>
    %154 = arith.addf %7, %153 : vector<8x128xf32>
    %155 = arith.negf %154 : vector<8x128xf32>
    %156 = math.exp %155 : vector<8x128xf32>
    %cst_29 = arith.constant 1.000000e+00 : f32
    %157 = vector.broadcast %cst_29 : f32 to vector<8x128xf32>
    %158 = arith.addf %157, %156 : vector<8x128xf32>
    %159 = arith.divf %157, %158 : vector<8x128xf32>
    %160 = vector.extract_strided_slice %152 {offsets = [0, 128], sizes = [8, 128], strides = [1, 1]} : vector<8x384xf32> to vector<8x128xf32>
    %161 = arith.addf %8, %160 : vector<8x128xf32>
    %162 = arith.negf %161 : vector<8x128xf32>
    %163 = math.exp %162 : vector<8x128xf32>
    %cst_30 = arith.constant 1.000000e+00 : f32
    %164 = vector.broadcast %cst_30 : f32 to vector<8x128xf32>
    %165 = arith.addf %164, %163 : vector<8x128xf32>
    %166 = arith.divf %164, %165 : vector<8x128xf32>
    %167 = vector.extract_strided_slice %152 {offsets = [0, 256], sizes = [8, 128], strides = [1, 1]} : vector<8x384xf32> to vector<8x128xf32>
    %168 = arith.addf %167, %12 : vector<8x128xf32>
    %169 = arith.mulf %159, %168 : vector<8x128xf32>
    %170 = arith.addf %9, %169 : vector<8x128xf32>
    %171 = math.tanh %170 : vector<8x128xf32>
    %172 = arith.subf %151, %171 : vector<8x128xf32>
    %173 = arith.mulf %166, %172 : vector<8x128xf32>
    %174 = arith.addf %171, %173 : vector<8x128xf32>
    %c7_i32 = arith.constant 7 : i32
    %cst_31 = arith.constant dense<0.000000e+00> : vector<8x384xf32>
    %175 = tpu.matmul %174, %1, %cst_31 {dimension_numbers = #tpu.dot_dimension_numbers<[1], [0], [0], [1], [0, 0, 1, 1], [], []>} : vector<8x128xf32>, vector<128x384xf32>, vector<8x384xf32> -> vector<8x384xf32>
    %176 = vector.extract_strided_slice %175 {offsets = [0, 0], sizes = [8, 128], strides = [1, 1]} : vector<8x384xf32> to vector<8x128xf32>
    %177 = arith.addf %7, %176 : vector<8x128xf32>
    %178 = arith.negf %177 : vector<8x128xf32>
    %179 = math.exp %178 : vector<8x128xf32>
    %cst_32 = arith.constant 1.000000e+00 : f32
    %180 = vector.broadcast %cst_32 : f32 to vector<8x128xf32>
    %181 = arith.addf %180, %179 : vector<8x128xf32>
    %182 = arith.divf %180, %181 : vector<8x128xf32>
    %183 = vector.extract_strided_slice %175 {offsets = [0, 128], sizes = [8, 128], strides = [1, 1]} : vector<8x384xf32> to vector<8x128xf32>
    %184 = arith.addf %8, %183 : vector<8x128xf32>
    %185 = arith.negf %184 : vector<8x128xf32>
    %186 = math.exp %185 : vector<8x128xf32>
    %cst_33 = arith.constant 1.000000e+00 : f32
    %187 = vector.broadcast %cst_33 : f32 to vector<8x128xf32>
    %188 = arith.addf %187, %186 : vector<8x128xf32>
    %189 = arith.divf %187, %188 : vector<8x128xf32>
    %190 = vector.extract_strided_slice %175 {offsets = [0, 256], sizes = [8, 128], strides = [1, 1]} : vector<8x384xf32> to vector<8x128xf32>
    %191 = arith.addf %190, %12 : vector<8x128xf32>
    %192 = arith.mulf %182, %191 : vector<8x128xf32>
    %193 = arith.addf %9, %192 : vector<8x128xf32>
    %194 = math.tanh %193 : vector<8x128xf32>
    %195 = arith.subf %174, %194 : vector<8x128xf32>
    %196 = arith.mulf %189, %195 : vector<8x128xf32>
    %197 = arith.addf %194, %196 : vector<8x128xf32>
    %c8_i32 = arith.constant 8 : i32
    %cst_34 = arith.constant dense<0.000000e+00> : vector<8x384xf32>
    %198 = tpu.matmul %197, %1, %cst_34 {dimension_numbers = #tpu.dot_dimension_numbers<[1], [0], [0], [1], [0, 0, 1, 1], [], []>} : vector<8x128xf32>, vector<128x384xf32>, vector<8x384xf32> -> vector<8x384xf32>
    %199 = vector.extract_strided_slice %198 {offsets = [0, 0], sizes = [8, 128], strides = [1, 1]} : vector<8x384xf32> to vector<8x128xf32>
    %200 = arith.addf %7, %199 : vector<8x128xf32>
    %201 = arith.negf %200 : vector<8x128xf32>
    %202 = math.exp %201 : vector<8x128xf32>
    %cst_35 = arith.constant 1.000000e+00 : f32
    %203 = vector.broadcast %cst_35 : f32 to vector<8x128xf32>
    %204 = arith.addf %203, %202 : vector<8x128xf32>
    %205 = arith.divf %203, %204 : vector<8x128xf32>
    %206 = vector.extract_strided_slice %198 {offsets = [0, 128], sizes = [8, 128], strides = [1, 1]} : vector<8x384xf32> to vector<8x128xf32>
    %207 = arith.addf %8, %206 : vector<8x128xf32>
    %208 = arith.negf %207 : vector<8x128xf32>
    %209 = math.exp %208 : vector<8x128xf32>
    %cst_36 = arith.constant 1.000000e+00 : f32
    %210 = vector.broadcast %cst_36 : f32 to vector<8x128xf32>
    %211 = arith.addf %210, %209 : vector<8x128xf32>
    %212 = arith.divf %210, %211 : vector<8x128xf32>
    %213 = vector.extract_strided_slice %198 {offsets = [0, 256], sizes = [8, 128], strides = [1, 1]} : vector<8x384xf32> to vector<8x128xf32>
    %214 = arith.addf %213, %12 : vector<8x128xf32>
    %215 = arith.mulf %205, %214 : vector<8x128xf32>
    %216 = arith.addf %9, %215 : vector<8x128xf32>
    %217 = math.tanh %216 : vector<8x128xf32>
    %218 = arith.subf %197, %217 : vector<8x128xf32>
    %219 = arith.mulf %212, %218 : vector<8x128xf32>
    %220 = arith.addf %217, %219 : vector<8x128xf32>
    %c9_i32 = arith.constant 9 : i32
    %cst_37 = arith.constant dense<0.000000e+00> : vector<8x384xf32>
    %221 = tpu.matmul %220, %1, %cst_37 {dimension_numbers = #tpu.dot_dimension_numbers<[1], [0], [0], [1], [0, 0, 1, 1], [], []>} : vector<8x128xf32>, vector<128x384xf32>, vector<8x384xf32> -> vector<8x384xf32>
    %222 = vector.extract_strided_slice %221 {offsets = [0, 0], sizes = [8, 128], strides = [1, 1]} : vector<8x384xf32> to vector<8x128xf32>
    %223 = arith.addf %7, %222 : vector<8x128xf32>
    %224 = arith.negf %223 : vector<8x128xf32>
    %225 = math.exp %224 : vector<8x128xf32>
    %cst_38 = arith.constant 1.000000e+00 : f32
    %226 = vector.broadcast %cst_38 : f32 to vector<8x128xf32>
    %227 = arith.addf %226, %225 : vector<8x128xf32>
    %228 = arith.divf %226, %227 : vector<8x128xf32>
    %229 = vector.extract_strided_slice %221 {offsets = [0, 128], sizes = [8, 128], strides = [1, 1]} : vector<8x384xf32> to vector<8x128xf32>
    %230 = arith.addf %8, %229 : vector<8x128xf32>
    %231 = arith.negf %230 : vector<8x128xf32>
    %232 = math.exp %231 : vector<8x128xf32>
    %cst_39 = arith.constant 1.000000e+00 : f32
    %233 = vector.broadcast %cst_39 : f32 to vector<8x128xf32>
    %234 = arith.addf %233, %232 : vector<8x128xf32>
    %235 = arith.divf %233, %234 : vector<8x128xf32>
    %236 = vector.extract_strided_slice %221 {offsets = [0, 256], sizes = [8, 128], strides = [1, 1]} : vector<8x384xf32> to vector<8x128xf32>
    %237 = arith.addf %236, %12 : vector<8x128xf32>
    %238 = arith.mulf %228, %237 : vector<8x128xf32>
    %239 = arith.addf %9, %238 : vector<8x128xf32>
    %240 = math.tanh %239 : vector<8x128xf32>
    %241 = arith.subf %220, %240 : vector<8x128xf32>
    %242 = arith.mulf %235, %241 : vector<8x128xf32>
    %243 = arith.addf %240, %242 : vector<8x128xf32>
    %c0_40 = arith.constant 0 : index
    %c0_41 = arith.constant 0 : index
    %244 = vector.load %arg5[%c0_40, %c0_41] : memref<1x128xf32, #tpu.memory_space<vmem>>, vector<1x128xf32>
    %245 = vector.broadcast %244 : vector<1x128xf32> to vector<8x128xf32>
    %246 = arith.mulf %243, %245 : vector<8x128xf32>
    %cst_42 = arith.constant dense<0.000000e+00> : vector<8xf32>
    %247 = vector.multi_reduction <add>, %246, %cst_42 [1] : vector<8x128xf32> to vector<8xf32>
    %248 = vector.shape_cast %247 : vector<8xf32> to vector<8x1xf32>
    %c0_43 = arith.constant 0 : index
    %249 = memref.load %arg6[%c0_43] : memref<1xf32, #tpu.memory_space<smem>>
    %250 = vector.broadcast %249 : f32 to vector<8x1xf32>
    %251 = arith.addf %248, %250 : vector<8x1xf32>
    %252 = arith.negf %251 : vector<8x1xf32>
    %253 = math.exp %252 : vector<8x1xf32>
    %cst_44 = arith.constant 1.000000e+00 : f32
    %254 = vector.broadcast %cst_44 : f32 to vector<8x1xf32>
    %255 = arith.addf %254, %253 : vector<8x1xf32>
    %256 = arith.divf %254, %255 : vector<8x1xf32>
    %c0_45 = arith.constant 0 : index
    %c0_46 = arith.constant 0 : index
    %257 = vector.load %arg7[%c0_45, %c0_46] : memref<8x1xf32, #tpu.memory_space<vmem>>, vector<8x1xf32>
    tpu.vector_store %arg7[%c0_45, %c0_46], %256 {strides = array<i32>} : memref<8x1xf32, #tpu.memory_space<vmem>>, vector<8x1xf32>,
    return
  }
}

</mosaic_0001>

<bundles_post_ra>
// kernel: torch_gru_forward.1
= control target key start
LH: loop header
LB: loop body
LE: loop exit
PB: predicated region body
PF: predicated region fallthrough
CT: control target
= control target key end

     0   :  { %13 = vsyncpa [#allocation4], 0  ;;  %s2451_s0 = inlined_call_operand.hbm [shape: f32[8,16], index: 0, kind: input, shape index: {}]   ;;  %s2452_s1 = inlined_call_operand.hbm [shape: f32[16,384], index: 1, kind: input, shape index: {}]   ;;  %s2453_s2 = inlined_call_operand.hbm [shape: f32[128,384], index: 2, kind: input, shape index: {}]   ;;  %s2454_s3 = inlined_call_operand.vmem [shape: f32[1,384], index: 3, kind: input, shape index: {}]   ;;  %s2455_s4 = inlined_call_operand.hbm [shape: f32[1,128], index: 4, kind: input, shape index: {}]   ;;  %s2456_s5 = inlined_call_operand.vmem [shape: f32[1,128], index: 5, kind: input, shape index: {}]   ;;  %s2457_s6 = inlined_call_operand.<no memory space> [shape: f32[1], index: 6, kind: input, shape index: {}]   ;;  %s2458_s7 = inlined_call_operand.vmem [shape: f32[8,1], index: 7, kind: output, shape index: {}]  }
   0x1   :  { %14 = vsyncpa [#allocation6], 0  ;;  %s31_s26 = sshll.u32 %s2452_s1, 4  ;;  %s32_s26 = int_to_ptr.hbm [resolvable:$true] %s31_s26 }
   0x2   :  { %15 = vsyncpa [#allocation9], 0  ;;  %s1613_s27 = smov [#allocation5]   ;;  %s21_s8 = sshll.u32 %s2451_s0, 4  ;;  %s22_s8 = int_to_ptr.hbm [resolvable:$true] %s21_s8 }
   0x3   :  { %s33_s28 = sshll.u32 %s1613_s27, 4  ;;  %s1614_s9 = smov 384   ;;  %s34_s28 = int_to_ptr.vmem [resolvable:$true] %s33_s28 }
   0x4   :  { %s1615_s10 = smov 24   ;;  %s1616_s11 = smov [#allocation3]  }
   0x5   :  { %39 = dma.hbm_to_vmem [thread:$0]  %s32_s26, 768, %s34_s28, [#allocation6], %s1614_s9, %s1614_s9, %s1615_s10  }
   0x6   :  { %s23_s12 = sshll.u32 %s1616_s11, 4  ;;  %s44_s15 = sshll.u32 %s2453_s2, 4  ;;  %s24_s12 = int_to_ptr.vmem [resolvable:$true] %s23_s12  ;;  %s45_s15 = int_to_ptr.hbm [resolvable:$true] %s44_s15 }
   0x7   :  { %26 = dma.hbm_to_vmem [thread:$0]  %s22_s8, 128, %s24_s12, [#allocation4]  }
   0x8   :  { %s60_s17 = sshll.u32 %s2455_s4, 4  ;;  %s1617_s18 = smov [#allocation7]   ;;  %s61_s17 = int_to_ptr.hbm [resolvable:$true] %s60_s17 }
   0x9   :  { %s46_s19 = sshll.u32 %s1617_s18, 4  ;;  %s1618_s0 = smov [#allocation8]   ;;  %s47_s19 = int_to_ptr.vmem [resolvable:$true] %s46_s19 }
   0xa   :  { %52 = dma.hbm_to_vmem [thread:$0]  %s45_s15, 6144, %s47_s19, [#allocation6], %s1614_s9, %s1614_s9, %s1615_s10  }
   0xb   :  { %s62_s20 = sshll.u32 %s1618_s0, 4  ;;  %s63_s20 = int_to_ptr.vmem [resolvable:$true] %s62_s20 }
   0xc   :  { %65 = dma.hbm_to_vmem [thread:$0]  %s61_s17, 16, %s63_s20, [#allocation9]  }
   0xd   :  { %1607 = dma.done.wait [#allocation4], 128  }
   0xe   :  { %1608 = vsyncadd [#allocation4], 4294967168 }
   0xf   :  { %1609 = dma.done.wait [#allocation6], 6912  }
  0x10   :  { %1610 = vsyncadd [#allocation6], 4294960384 }
  0x11   :  { %1611 = dma.done.wait [#allocation9], 16  }
  0x12   :  { %1612 = vsyncadd [#allocation9], 4294967280  ;;  %v1672_v0 = vld [vmem:[#allocation7 + $0x168] sm:$0xff]  ;;  %v1674_v1 = vld [vmem:[#allocation7 + $0x150] sm:$0xff]  ;;  %vm149_vm0 = vcmask 130048   ;;  %v1619_v48 = vmov 0.0  }
  0x13   :  { %217 = vmatpush.msra.mxu3 %v1672_v0  ;;  %v1677_v2 = vld [vmem:[#allocation7 + $0x170] sm:$0xff]  ;;  %v1679_v3 = vld [vmem:[#allocation7 + $0x138] sm:$0xff]  ;;  %v1685_v5 = vld [vmem:[#allocation7 + $0x140] sm:$0xff] }
  0x14   :  { %237 = vmatpush.msra.mxu0 %v1677_v2  ;;  %v1682_v4 = vld [vmem:[#allocation7 + $0x158] sm:$0xff]  ;;  %v1687_v6 = vld [vmem:[#allocation7 + $0x120] sm:$0xff]  ;;  %v1691_v7 = vld [vmem:[#allocation7 + $0x128] sm:$0xff] }
  0x15   :  { %218 = vmatpush.msra.mxu3 %v1674_v1  ;;  %v1693_v8 = vld [vmem:[#allocation7 + $0x108] sm:$0xff]  ;;  %v1697_v9 = vld [vmem:[#allocation7 + $0x110] sm:$0xff]  ;;  %v1703_v13 = vld [vmem:[#allocation7 + $0xf8] sm:$0xff] }
  0x16   :  { %238 = vmatpush.msra.mxu0 %v1682_v4  ;;  %v138_v10 = vld [vmem:[#allocation5 + $0x18] sm:$0xff]  ;;  %v1699_v11 = vld [vmem:[#allocation7 + $0xf0] sm:$0xff]  ;;  %v1705_v15 = vld [vmem:[#allocation7 + $0xd8] sm:$0xff] }
  0x17   :  { %219 = vmatpush.msra.mxu3 %v1679_v3  ;;  %167 = vmatpush.msra.mxu1 %v138_v10  ;;  %v135_v12 = vld [vmem:[#allocation5] sm:$0xff]  ;;  %v86_v14 = vld [vmem:[#allocation3] sm:$0xff]  ;;  %v1709_v17 = vld [vmem:[#allocation7 + $0xe0] sm:$0xff] }
  0x18   :  { %239 = vmatpush.msra.mxu0 %v1685_v5  ;;  %v139_v16 = vld [vmem:[#allocation5 + $0x20] sm:$0xff]  ;;  %v136_v18 = vld [vmem:[#allocation5 + $0x8] sm:$0xff]  ;;  %v1712_v19 = vld [vmem:[#allocation7 + $0xc0] sm:$0xff] }
  0x19   :  { %220 = vmatpush.msra.mxu3 %v1687_v6  ;;  %168 = vmatpush.msra.mxu1 %v135_v12  ;;  %v1715_v20 = vld [vmem:[#allocation7 + $0x178] sm:$0xff]  ;;  %v1718_v21 = vld [vmem:[#allocation7 + $0xc8] sm:$0xff]  ;;  %v1723_v23 = vld [vmem:[#allocation7 + $0x160] sm:$0xff] }
  0x1a   :  { %240 = vmatpush.msra.mxu0 %v1691_v7  ;;  %1325 = vmatmul.msk.f32.vlgmr.msra.gmra.mxu1 %vm149_vm0, %v86_v14  ;;  %v1720_v22 = vld [vmem:[#allocation7 + $0xa8] sm:$0xff]  ;;  %v1726_v24 = vld [vmem:[#allocation7 + $0xb0] sm:$0xff]  ;;  %v140_v26 = vld [vmem:[#allocation5 + $0x28] sm:$0xff] }
  0x1b   :  { %221 = vmatpush.msra.mxu3 %v1693_v8  ;;  %187 = vmatpush.msrb.mxu1 %v139_v16  ;;  %v1729_v25 = vld [vmem:[#allocation7 + $0x90] sm:$0xff]  ;;  %v1733_v27 = vld [vmem:[#allocation7 + $0x98] sm:$0xff]  ;;  %v1736_v28 = vld [vmem:[#allocation7 + $0x148] sm:$0xff] }
  0x1c   :  { %241 = vmatpush.msra.mxu0 %v1697_v9  ;;  %v1738_v29 = vld [vmem:[#allocation7 + $0x78] sm:$0xff]  ;;  %207 = vmatpush.msra.mxu2 %v140_v26  ;;  %v137_v30 = vld [vmem:[#allocation5 + $0x10] sm:$0xff]  ;;  %v1745_v32 = vld [vmem:[#allocation7 + $0x130] sm:$0xff] }
  0x1d   :  { %222 = vmatpush.msra.mxu3 %v1699_v11  ;;  %188 = vmatpush.msrb.mxu1 %v136_v18  ;;  %v1742_v31 = vld [vmem:[#allocation7 + $0x80] sm:$0xff]  ;;  %v1752_v34 = vld [vmem:[#allocation7 + $0x68] sm:$0xff]  ;;  %v1754_v35 = vld [vmem:[#allocation7 + $0x118] sm:$0xff] }
  0x1e   :  { %242 = vmatpush.msra.mxu0 %v1703_v13  ;;  %v1747_v33 = vld [vmem:[#allocation7 + $0x60] sm:$0xff]  ;;  %208 = vmatpush.msra.mxu2 %v137_v30  ;;  %v1756_v36 = vld [vmem:[#allocation7 + $0x48] sm:$0xff]  ;;  %v1761_v37 = vld [vmem:[#allocation7 + $0x50] sm:$0xff] }
  0x1f   :  { %223 = vmatpush.msra.mxu3 %v1705_v15  ;;  %257 = vmatpush.msra.mxu1 %v1715_v20  ;;  %v1763_v38 = vld [vmem:[#allocation7 + $0x100] sm:$0xff]  ;;  %v1766_v39 = vld [vmem:[#allocation7 + $0x30] sm:$0xff]  ;;  %v1771_v40 = vld [vmem:[#allocation7 + $0x38] sm:$0xff] }
  0x20   :  { %243 = vmatpush.msra.mxu0 %v1709_v17  ;;  %1327 = vmatmul.msk.f32.vlgmr.msra.gmra.mxu2 %vm149_vm0, %v86_v14  ;;  %2497 = vst [vmem:[#allocation13_spill] sm:$0xff] %v1766_v39  ;;  %v1773_v41 = vld [vmem:[#allocation7 + $0xe8] sm:$0xff]  ;;  %v1776_v42 = vld [vmem:[#allocation7 + $0x18] sm:$0xff]  ;;  %v1781_v43 = vld [vmem:[#allocation7 + $0x20] sm:$0xff] }
  0x21   :  { %224 = vmatpush.msra.mxu3 %v1712_v19  ;;  %258 = vmatpush.msra.mxu1 %v1723_v23  ;;  %2498 = vst [vmem:[#allocation14_spill] sm:$0xff] %v1771_v40  ;;  %v1783_v44 = vld [vmem:[#allocation7 + $0xd0] sm:$0xff]  ;;  %v1786_v45 = vld [vmem:[#allocation7] sm:$0xff]  ;;  %v1791_v46 = vld [vmem:[#allocation7 + $0x8] sm:$0xff] }
  0x22   :  { %244 = vmatpush.msra.mxu0 %v1718_v21  ;;  %1326 = vmatmul.msk.f32.vlgmr.msrb.gmra.mxu1 %vm149_vm0, %v86_v14  ;;  %2499 = vst [vmem:[#allocation15_spill] sm:$0xff] %v1776_v42  ;;  %v1796_v47 = vld [vmem:[#allocation7 + $0xb8] sm:$0xff]  ;;  %v1801_v49 = vld [vmem:[#allocation7 + $0xa0] sm:$0xff]  ;;  %v1804_v50 = vld [vmem:[#allocation7 + $0x88] sm:$0xff] }
  0x23   :  { %225 = vmatpush.msra.mxu3 %v1720_v22  ;;  %259 = vmatpush.msra.mxu1 %v1736_v28  ;;  %2500 = vst [vmem:[#allocation16_spill] sm:$0xff] %v1781_v43  ;;  %v1810_v51 = vld [vmem:[#allocation7 + $0x70] sm:$0xff]  ;;  %v1816_v52 = vld [vmem:[#allocation7 + $0x58] sm:$0xff]  ;;  %v1822_v53 = vld [vmem:[#allocation7 + $0x40] sm:$0xff] }
  0x24   :  { %245 = vmatpush.msra.mxu0 %v1726_v24  ;;  %324 = vmatpush.msrb.mxu2 %v1672_v0  ;;  %2501 = vst [vmem:[#allocation17_spill] sm:$0xff] %v1786_v45  ;;  %v1828_v54 = vld [vmem:[#allocation7 + $0x28] sm:$0xff]  ;;  %v1834_v55 = vld [vmem:[#allocation7 + $0x10] sm:$0xff] }
  0x25   :  { %226 = vmatpush.msra.mxu3 %v1729_v25  ;;  %260 = vmatpush.msra.mxu1 %v1745_v32  ;;  %2502 = vst [vmem:[#allocation18_spill] sm:$0xff] %v1791_v46  ;;  %v141_v57 = vld [vmem:[%s2454_s3] sm:$0x7] }
  0x26   :  { %246 = vmatpush.msra.mxu0 %v1733_v27  ;;  %325 = vmatpush.msrb.mxu2 %v1674_v1  ;;  %2503 = vst [vmem:[#allocation19_spill] sm:$0xff] %v1828_v54  ;;  %v144_v58 = vperm.slane %v141_v57, 1  ;;  %v143_v61 = vperm.slane %v141_v57, 0 }
  0x27   :  { %227 = vmatpush.msra.mxu3 %v1738_v29  ;;  %261 = vmatpush.msra.mxu1 %v1754_v35  ;;  %2504 = vst [vmem:[#allocation20_spill] sm:$0xff] %v1834_v55 }
  0x28   :  { %247 = vmatpush.msra.mxu0 %v1742_v31  ;;  %326 = vmatpush.msrb.mxu2 %v1679_v3 }
  0x29   :  { %228 = vmatpush.msra.mxu3 %v1747_v33  ;;  %262 = vmatpush.msra.mxu1 %v1763_v38 }
  0x2a   :  { %248 = vmatpush.msra.mxu0 %v1752_v34  ;;  %327 = vmatpush.msrb.mxu2 %v1687_v6 }
  0x2b   :  { %229 = vmatpush.msra.mxu3 %v1756_v36  ;;  %263 = vmatpush.msra.mxu1 %v1773_v41 }
  0x2c   :  { %249 = vmatpush.msra.mxu0 %v1761_v37  ;;  %328 = vmatpush.msrb.mxu2 %v1693_v8 }
  0x2d   :  { %230 = vmatpush.msra.mxu3 %v1766_v39  ;;  %264 = vmatpush.msra.mxu1 %v1783_v44 }
  0x2e   :  { %250 = vmatpush.msra.mxu0 %v1771_v40  ;;  %329 = vmatpush.msrb.mxu2 %v1699_v11 }
  0x2f   :  { %231 = vmatpush.msra.mxu3 %v1776_v42  ;;  %265 = vmatpush.msra.mxu1 %v1796_v47 }
  0x30   :  { %251 = vmatpush.msra.mxu0 %v1781_v43  ;;  %330 = vmatpush.msrb.mxu2 %v1705_v15 }
  0x31   :  { %232 = vmatpush.msra.mxu3 %v1786_v45  ;;  %266 = vmatpush.msra.mxu1 %v1801_v49 }
  0x32   :  { %233 = vmatmul.f32.vlgmr.msra.gmra.mxu3 %v1619_v48  ;;  %252 = vmatpush.msra.mxu0 %v1791_v46 }
  0x33   :  { %253 = vmatmul.f32.vlgmr.msra.gmra.mxu0 %v1619_v48  ;;  %344 = vmatpush.msrb.mxu3 %v1677_v2 }
  0x34   :  { %364 = vmatpush.msrb.mxu0 %v1715_v20  ;;  %267 = vmatpush.msra.mxu1 %v1804_v50 }
  0x35   :  { %345 = vmatpush.msrb.mxu3 %v1682_v4  ;;  %331 = vmatpush.msrb.mxu2 %v1712_v19 }
  0x36   :  { %365 = vmatpush.msrb.mxu0 %v1723_v23  ;;  %268 = vmatpush.msra.mxu1 %v1810_v51 }
  0x37   :  { %346 = vmatpush.msrb.mxu3 %v1685_v5  ;;  %332 = vmatpush.msrb.mxu2 %v1720_v22 }
  0x38   :  { %366 = vmatpush.msrb.mxu0 %v1736_v28  ;;  %269 = vmatpush.msra.mxu1 %v1816_v52 }
  0x39   :  { %347 = vmatpush.msrb.mxu3 %v1691_v7  ;;  %333 = vmatpush.msrb.mxu2 %v1729_v25 }
  0x3a   :  { %367 = vmatpush.msrb.mxu0 %v1745_v32  ;;  %270 = vmatpush.msra.mxu1 %v1822_v53 }
  0x3b   :  { %348 = vmatpush.msrb.mxu3 %v1697_v9  ;;  %334 = vmatpush.msrb.mxu2 %v1738_v29 }
  0x3c   :  { %368 = vmatpush.msrb.mxu0 %v1754_v35  ;;  %271 = vmatpush.msra.mxu1 %v1828_v54 }
  0x3d   :  { %349 = vmatpush.msrb.mxu3 %v1703_v13  ;;  %335 = vmatpush.msrb.mxu2 %v1747_v33 }
  0x3e   :  { %369 = vmatpush.msrb.mxu0 %v1763_v38  ;;  %272 = vmatpush.msra.mxu1 %v1834_v55 }
  0x3f   :  { %350 = vmatpush.msrb.mxu3 %v1709_v17  ;;  %273 = vmatmul.f32.vlgmr.msra.gmra.mxu1 %v1619_v48 }
  0x40   :  { %370 = vmatpush.msrb.mxu0 %v1773_v41  ;;  %431 = vmatpush.msrb.mxu1 %v1672_v0 }
  0x41   :  { %351 = vmatpush.msrb.mxu3 %v1718_v21  ;;  %336 = vmatpush.msrb.mxu2 %v1756_v36 }
  0x42   :  { %371 = vmatpush.msrb.mxu0 %v1783_v44  ;;  %432 = vmatpush.msrb.mxu1 %v1674_v1 }
  0x43   :  { %352 = vmatpush.msrb.mxu3 %v1726_v24  ;;  %337 = vmatpush.msrb.mxu2 %v1766_v39 }
  0x44   :  { %372 = vmatpush.msrb.mxu0 %v1796_v47  ;;  %433 = vmatpush.msrb.mxu1 %v1679_v3 }
  0x45   :  { %353 = vmatpush.msrb.mxu3 %v1733_v27  ;;  %338 = vmatpush.msrb.mxu2 %v1776_v42 }
  0x46   :  { %373 = vmatpush.msrb.mxu0 %v1801_v49  ;;  %434 = vmatpush.msrb.mxu1 %v1687_v6 }
  0x47   :  { %354 = vmatpush.msrb.mxu3 %v1742_v31  ;;  %339 = vmatpush.msrb.mxu2 %v1786_v45 }
  0x48   :  { %374 = vmatpush.msrb.mxu0 %v1804_v50  ;;  %435 = vmatpush.msrb.mxu1 %v1693_v8 }
  0x49   :  { %355 = vmatpush.msrb.mxu3 %v1752_v34  ;;  %451 = vmatpush.msra.mxu2 %v1677_v2 }
  0x4a   :  { %375 = vmatpush.msrb.mxu0 %v1810_v51  ;;  %436 = vmatpush.msrb.mxu1 %v1699_v11 }
  0x4b   :  { %356 = vmatpush.msrb.mxu3 %v1761_v37  ;;  %452 = vmatpush.msra.mxu2 %v1682_v4 }
  0x4c   :  { %376 = vmatpush.msrb.mxu0 %v1816_v52  ;;  %437 = vmatpush.msrb.mxu1 %v1705_v15 }
  0x4d   :  { %357 = vmatpush.msrb.mxu3 %v1771_v40  ;;  %453 = vmatpush.msra.mxu2 %v1685_v5 }
  0x4e   :  { %377 = vmatpush.msrb.mxu0 %v1822_v53  ;;  %438 = vmatpush.msrb.mxu1 %v1712_v19 }
  0x4f   :  { %358 = vmatpush.msrb.mxu3 %v1781_v43  ;;  %454 = vmatpush.msra.mxu2 %v1691_v7 }
  0x50   :  { %378 = vmatpush.msrb.mxu0 %v1828_v54  ;;  %439 = vmatpush.msrb.mxu1 %v1720_v22 }
  0x51   :  { %359 = vmatpush.msrb.mxu3 %v1791_v46  ;;  %455 = vmatpush.msra.mxu2 %v1697_v9 }
  0x52   :  { %379 = vmatpush.msrb.mxu0 %v1834_v55  ;;  %440 = vmatpush.msrb.mxu1 %v1729_v25 }
  0x53   :  { %471 = vmatpush.msra.mxu3 %v1715_v20  ;;  %456 = vmatpush.msra.mxu2 %v1703_v13 }
  0x54   :  { %538 = vmatpush.msra.mxu0 %v1672_v0  ;;  %441 = vmatpush.msrb.mxu1 %v1738_v29 }
  0x55   :  { %472 = vmatpush.msra.mxu3 %v1723_v23  ;;  %457 = vmatpush.msra.mxu2 %v1709_v17 }
  0x56   :  { %539 = vmatpush.msra.mxu0 %v1674_v1  ;;  %442 = vmatpush.msrb.mxu1 %v1747_v33 }
  0x57   :  { %473 = vmatpush.msra.mxu3 %v1736_v28  ;;  %458 = vmatpush.msra.mxu2 %v1718_v21 }
  0x58   :  { %540 = vmatpush.msra.mxu0 %v1679_v3  ;;  %443 = vmatpush.msrb.mxu1 %v1756_v36 }
  0x59   :  { %474 = vmatpush.msra.mxu3 %v1745_v32  ;;  %459 = vmatpush.msra.mxu2 %v1726_v24 }
  0x5a   :  { %541 = vmatpush.msra.mxu0 %v1687_v6  ;;  %444 = vmatpush.msrb.mxu1 %v1766_v39 }
  0x5b   :  { %475 = vmatpush.msra.mxu3 %v1754_v35  ;;  %460 = vmatpush.msra.mxu2 %v1733_v27 }
  0x5c   :  { %542 = vmatpush.msra.mxu0 %v1693_v8  ;;  %445 = vmatpush.msrb.mxu1 %v1776_v42 }
  0x5d   :  { %476 = vmatpush.msra.mxu3 %v1763_v38  ;;  %461 = vmatpush.msra.mxu2 %v1742_v31 }
  0x5e   :  { %543 = vmatpush.msra.mxu0 %v1699_v11  ;;  %446 = vmatpush.msrb.mxu1 %v1786_v45 }
  0x5f   :  { %477 = vmatpush.msra.mxu3 %v1773_v41  ;;  %462 = vmatpush.msra.mxu2 %v1752_v34 }
  0x60   :  { %544 = vmatpush.msra.mxu0 %v1705_v15  ;;  %558 = vmatpush.msra.mxu1 %v1677_v2 }
  0x61   :  { %478 = vmatpush.msra.mxu3 %v1783_v44  ;;  %463 = vmatpush.msra.mxu2 %v1761_v37 }
  0x62   :  { %545 = vmatpush.msra.mxu0 %v1712_v19  ;;  %559 = vmatpush.msra.mxu1 %v1682_v4 }
  0x63   :  { %479 = vmatpush.msra.mxu3 %v1796_v47  ;;  %464 = vmatpush.msra.mxu2 %v1771_v40 }
  0x64   :  { %546 = vmatpush.msra.mxu0 %v1720_v22  ;;  %560 = vmatpush.msra.mxu1 %v1685_v5 }
  0x65   :  { %480 = vmatpush.msra.mxu3 %v1801_v49  ;;  %465 = vmatpush.msra.mxu2 %v1781_v43 }
  0x66   :  { %547 = vmatpush.msra.mxu0 %v1729_v25  ;;  %561 = vmatpush.msra.mxu1 %v1691_v7 }
  0x67   :  { %481 = vmatpush.msra.mxu3 %v1804_v50  ;;  %466 = vmatpush.msra.mxu2 %v1791_v46 }
  0x68   :  { %548 = vmatpush.msra.mxu0 %v1738_v29  ;;  %562 = vmatpush.msra.mxu1 %v1697_v9 }
  0x69   :  { %482 = vmatpush.msra.mxu3 %v1810_v51 }
  0x6a   :  { %549 = vmatpush.msra.mxu0 %v1747_v33  ;;  %563 = vmatpush.msra.mxu1 %v1703_v13 }
  0x6b   :  { %483 = vmatpush.msra.mxu3 %v1816_v52 }
  0x6c   :  { %550 = vmatpush.msra.mxu0 %v1756_v36  ;;  %564 = vmatpush.msra.mxu1 %v1709_v17 }
  0x6d   :  { %484 = vmatpush.msra.mxu3 %v1822_v53 }
  0x6e   :  { %551 = vmatpush.msra.mxu0 %v1766_v39  ;;  %565 = vmatpush.msra.mxu1 %v1718_v21 }
  0x6f   :  { %485 = vmatpush.msra.mxu3 %v1828_v54 }
  0x70   :  { %552 = vmatpush.msra.mxu0 %v1776_v42  ;;  %566 = vmatpush.msra.mxu1 %v1726_v24 }
  0x71   :  { %486 = vmatpush.msra.mxu3 %v1834_v55  ;;  %v1956_v55 = vld [vmem:[#allocation8] ss:$0 sm:$0xff] }
  0x72   :  { %553 = vmatpush.msra.mxu0 %v1786_v45  ;;  %567 = vmatpush.msra.mxu1 %v1733_v27 }
  0x74   :  { %568 = vmatpush.msra.mxu1 %v1742_v31 }
  0x76   :  { %569 = vmatpush.msra.mxu1 %v1752_v34 }
  0x78   :  { %570 = vmatpush.msra.mxu1 %v1761_v37 }
  0x7a   :  { %571 = vmatpush.msra.mxu1 %v1771_v40 }
  0x7c   :  { %572 = vmatpush.msra.mxu1 %v1781_v43 }
  0x7e   :  { %573 = vmatpush.msra.mxu1 %v1791_v46 }
  0x97   :  { %v170_v56 = vpop.f32.mrf.mxu1 }
  0x98   :  { %v1953_v10 = vadd.f32 %v170_v56, %v143_v61 }
  0x9a   :  { %2506 = vst [vmem:[#allocation22_spill] sm:$0xff] %v1953_v10 }
  0x9f   :  { %v190_v59 = vpop.f32.mrf.mxu1 }
  0xa0   :  { %v1950_v60 = vadd.f32 %v190_v59, %v144_v58 }
  0xa2   :  { %2505 = vst [vmem:[#allocation21_spill] sm:$0xff] %v1950_v60 }
  0xb0   :  { %v254_v62 = vpop.f32.mrf.mxu0 }
  0xb1   :  { %v297_v63 = vadd.f32 %v254_v62, %v1950_v60 }
  0xb3   :  { %v1329_v12 = vmul.f32 -1.442695, %v297_v63 }
  0xb5   :  { %v234_v14 = vpop.f32.mrf.mxu3  ;;  %1358 = vpow2.f32 %v1329_v12 }
  0xb6   :  { %v277_v16 = vadd.f32 %v234_v14, %v1953_v10  ;;  %v145_v14 = vperm.slane %v141_v57, 2 }
  0xb8   :  { %v1328_v18 = vmul.f32 -1.442695, %v277_v16  ;;  %v210_v16 = vpop.f32.mrf.mxu2 }
  0xb9   :  { %v1959_v42 = vadd.f32 %v210_v16, %v145_v14 }
  0xba   :  { %1360 = vpow2.f32 %v1328_v18 }
  0xbb   :  { %v1359_v26 = vpop.eup %1358 }
  0xbc   :  { %v301_v48 = vadd.f32 1.0, %v1359_v26  ;;  %v274_v62 = vpop.f32.mrf.mxu1 }
  0xbd   :  { %v317_v26 = vadd.f32 %v1956_v55, %v274_v62 }
  0xbe   :  { %vm307_vm5 = vweird.f32 %v301_v48  ;;  %v313_v57 = vand.u32 2147483648, %v301_v48 }
  0xc0   :  { %v1361_v30 = vpop.eup %1360  ;;  %v314_v62 = vor.u32 1.1754944e-38, %v313_v57  ;;  %v2515_v57 = vld [vmem:[#allocation21_spill] sm:$0xff] }
  0xc1   :  { %v281_v46 = vadd.f32 1.0, %v1361_v30 }
  0xc3   :  { %1362 = vrcp.f32 %v281_v46  ;;  %v293_v63 = vand.u32 2147483648, %v281_v46  ;;  %v291_v12 = vand.u32 2147483647, %v281_v46  ;;  %vm287_vm2 = vweird.f32 %v281_v46 }
  0xc4   :  { %1364 = vrcp.f32 %v301_v48 }
  0xc5   :  { %v294_v10 = vor.u32 1.1754944e-38, %v293_v63  ;;  %vm292_vm4 = vcmp.eq.f32.partialorder %v291_v12, 8.507059e+37 }
  0xc9   :  { %v1363_v58 = vpop.eup %1362 }
  0xca   :  { %v1365_v59 = vpop.eup %1364  ;;  %v283_v45 = vmul.f32 %v1363_v58, %v281_v46  ;;  %vm288_vm1 = vweird.f32 %v1363_v58  ;;  %v311_v46 = vand.u32 2147483647, %v301_v48 }
  0xcb   :  { %v303_v61 = vmul.f32 %v1365_v59, %v301_v48  ;;  %vm289_vm3 = vmor %vm287_vm2, %vm288_vm1  ;;  %vm308_vm6 = vweird.f32 %v1365_v59  ;;  %v2511_v48 = vld [vmem:[#allocation20_spill] sm:$0xff] }
  0xcc   :  { %v284_v56 = vsub.f32 1.0, %v283_v45  ;;  %vm309_vm7 = vmor %vm307_vm5, %vm308_vm6  ;;  %vm312_vm8 = vcmp.eq.f32.partialorder %v311_v46, 8.507059e+37 }
  0xcd   :  { %v304_v30 = vsub.f32 1.0, %v303_v61 }
  0xce   :  { %v285_v60 = vmul.f32 %v1363_v58, %v284_v56 }
  0xcf   :  { %v305_v40 = vmul.f32 %v1365_v59, %v304_v30 }
  0xd0   :  { %v286_v18 = vadd.f32 %v1363_v58, %v285_v60 }
  0xd1   :  { %v306_v60 = vadd.f32 %v1365_v59, %v305_v40  ;;  %v2507_v40 = vld [vmem:[#allocation14_spill] sm:$0xff] }
  0xd2   :  { %v290_v43 = vsel %vm289_vm3, %v1363_v58, %v286_v18  ;;  %v2513_v18 = vld [vmem:[#allocation18_spill] sm:$0xff] }
  0xd3   :  { %v295_v45 = vsel %vm292_vm4, %v294_v10, %v290_v43  ;;  %v310_v61 = vsel %vm309_vm7, %v1365_v59, %v306_v60  ;;  %v2508_v43 = vld [vmem:[#allocation19_spill] sm:$0xff]  ;;  %v2510_v10 = vld [vmem:[#allocation16_spill] sm:$0xff]  ;;  %v2512_v59 = vld [vmem:[#allocation17_spill] sm:$0xff] }
  0xd4   :  { %v318_v54 = vmul.f32 %v317_v26, %v295_v45  ;;  %v315_v12 = vsel %vm312_vm8, %v314_v62, %v310_v61  ;;  %v2514_v45 = vld [vmem:[#allocation22_spill] sm:$0xff] }
  0xd6   :  { %v319_v56 = vadd.f32 %v318_v54, %v1959_v42  ;;  %v2509_v54 = vld [vmem:[#allocation15_spill] sm:$0xff] }
  0xd8   :  { %1366 = vtanh.f32 %v319_v56 }
  0xde   :  { %v1367_v63 = vpop.eup %1366 }
  0xdf   :  { %v321_v58 = vsub.f32 0.0, %v1367_v63 }
  0xe1   :  { %v322_v14 = vmul.f32 %v321_v58, %v315_v12 }
  0xe3   :  { %v1962_v16 = vadd.f32 %v1367_v63, %v322_v14 }
  0xe5   :  { %340 = vmatmul.f32.vlgmr.msrb.gmra.mxu2 %v1962_v16  ;;  %360 = vmatmul.f32.vlgmr.msrb.gmra.mxu3 %v1962_v16 }
  0xe6   :  { %380 = vmatmul.f32.vlgmr.msrb.gmra.mxu0 %v1962_v16  ;;  %578 = vmatpush.msrb.mxu2 %v1715_v20 }
  0xe7   :  { %645 = vmatpush.msrb.mxu3 %v1672_v0  ;;  %665 = vmatpush.msrb.mxu0 %v1677_v2 }
  0xe8   :  { %579 = vmatpush.msrb.mxu2 %v1723_v23 }
  0xe9   :  { %646 = vmatpush.msrb.mxu3 %v1674_v1  ;;  %666 = vmatpush.msrb.mxu0 %v1682_v4 }
  0xea   :  { %580 = vmatpush.msrb.mxu2 %v1736_v28 }
  0xeb   :  { %647 = vmatpush.msrb.mxu3 %v1679_v3  ;;  %667 = vmatpush.msrb.mxu0 %v1685_v5 }
  0xec   :  { %581 = vmatpush.msrb.mxu2 %v1745_v32 }
  0xed   :  { %648 = vmatpush.msrb.mxu3 %v1687_v6  ;;  %668 = vmatpush.msrb.mxu0 %v1691_v7 }
  0xee   :  { %582 = vmatpush.msrb.mxu2 %v1754_v35 }
  0xef   :  { %649 = vmatpush.msrb.mxu3 %v1693_v8  ;;  %669 = vmatpush.msrb.mxu0 %v1697_v9 }
  0xf0   :  { %583 = vmatpush.msrb.mxu2 %v1763_v38 }
  0xf1   :  { %650 = vmatpush.msrb.mxu3 %v1699_v11  ;;  %670 = vmatpush.msrb.mxu0 %v1703_v13 }
  0xf2   :  { %584 = vmatpush.msrb.mxu2 %v1773_v41 }
  0xf3   :  { %651 = vmatpush.msrb.mxu3 %v1705_v15  ;;  %671 = vmatpush.msrb.mxu0 %v1709_v17 }
  0xf4   :  { %585 = vmatpush.msrb.mxu2 %v1783_v44 }
  0xf5   :  { %652 = vmatpush.msrb.mxu3 %v1712_v19  ;;  %672 = vmatpush.msrb.mxu0 %v1718_v21 }
  0xf6   :  { %586 = vmatpush.msrb.mxu2 %v1796_v47 }
  0xf7   :  { %653 = vmatpush.msrb.mxu3 %v1720_v22  ;;  %673 = vmatpush.msrb.mxu0 %v1726_v24 }
  0xf8   :  { %587 = vmatpush.msrb.mxu2 %v1801_v49 }
  0xf9   :  { %654 = vmatpush.msrb.mxu3 %v1729_v25  ;;  %674 = vmatpush.msrb.mxu0 %v1733_v27 }
  0xfa   :  { %588 = vmatpush.msrb.mxu2 %v1804_v50 }
  0xfb   :  { %655 = vmatpush.msrb.mxu3 %v1738_v29  ;;  %675 = vmatpush.msrb.mxu0 %v1742_v31 }
  0xfc   :  { %589 = vmatpush.msrb.mxu2 %v1810_v51 }
  0xfd   :  { %656 = vmatpush.msrb.mxu3 %v1747_v33  ;;  %676 = vmatpush.msrb.mxu0 %v1752_v34 }
  0xfe   :  { %590 = vmatpush.msrb.mxu2 %v1816_v52 }
  0xff   :  { %657 = vmatpush.msrb.mxu3 %v1756_v36  ;;  %677 = vmatpush.msrb.mxu0 %v1761_v37 }
 0x100   :  { %591 = vmatpush.msrb.mxu2 %v1822_v53 }
 0x101   :  { %658 = vmatpush.msrb.mxu3 %v1766_v39  ;;  %678 = vmatpush.msrb.mxu0 %v2507_v40 }
 0x102   :  { %592 = vmatpush.msrb.mxu2 %v2508_v43 }
 0x103   :  { %659 = vmatpush.msrb.mxu3 %v2509_v54  ;;  %679 = vmatpush.msrb.mxu0 %v2510_v10 }
 0x104   :  { %593 = vmatpush.msrb.mxu2 %v2511_v48 }
 0x105   :  { %660 = vmatpush.msrb.mxu3 %v2512_v59  ;;  %680 = vmatpush.msrb.mxu0 %v2513_v18 }
 0x168   :  { %v341_v26 = vpop.f32.mrf.mxu2  ;;  %v361_v30 = vpop.f32.mrf.mxu3 }
 0x169   :  { %v384_v56 = vadd.f32 %v341_v26, %v2514_v45  ;;  %v404_v60 = vadd.f32 %v361_v30, %v2515_v57  ;;  %v381_v30 = vpop.f32.mrf.mxu0 }
 0x16b   :  { %v1330_v46 = vmul.f32 -1.442695, %v384_v56  ;;  %v1331_v62 = vmul.f32 -1.442695, %v404_v60 }
 0x16d   :  { %1368 = vpow2.f32 %v1330_v46 }
 0x16e   :  { %1370 = vpow2.f32 %v1331_v62  ;;  %v424_v62 = vadd.f32 %v1956_v55, %v381_v30 }
 0x173   :  { %v1369_v61 = vpop.eup %1368 }
 0x174   :  { %v1371_v63 = vpop.eup %1370  ;;  %v388_v58 = vadd.f32 1.0, %v1369_v61 }
 0x175   :  { %v408_v12 = vadd.f32 1.0, %v1371_v63 }
 0x176   :  { %1372 = vrcp.f32 %v388_v58  ;;  %v400_v10 = vand.u32 2147483648, %v388_v58  ;;  %v398_v26 = vand.u32 2147483647, %v388_v58  ;;  %vm394_vm10 = vweird.f32 %v388_v58 }
 0x177   :  { %1374 = vrcp.f32 %v408_v12  ;;  %vm414_vm14 = vweird.f32 %v408_v12  ;;  %v418_v39 = vand.u32 2147483647, %v408_v12 }
 0x178   :  { %v401_v60 = vor.u32 1.1754944e-38, %v400_v10  ;;  %vm399_vm12 = vcmp.eq.f32.partialorder %v398_v26, 8.507059e+37 }
 0x179   :  { %vm419_vm0 = vcmp.eq.f32.partialorder %v418_v39, 8.507059e+37 }
 0x17c   :  { %v1373_v14 = vpop.eup %1372 }
 0x17d   :  { %v1375_v59 = vpop.eup %1374  ;;  %v390_v48 = vmul.f32 %v1373_v14, %v388_v58  ;;  %vm395_vm9 = vweird.f32 %v1373_v14 }
 0x17e   :  { %v410_v54 = vmul.f32 %v1375_v59, %v408_v12  ;;  %vm396_vm11 = vmor %vm394_vm10, %vm395_vm9  ;;  %vm415_vm13 = vweird.f32 %v1375_v59 }
 0x17f   :  { %v391_v18 = vsub.f32 1.0, %v390_v48  ;;  %vm416_vm15 = vmor %vm414_vm14, %vm415_vm13 }
 0x180   :  { %v411_v46 = vsub.f32 1.0, %v410_v54 }
 0x181   :  { %v392_v43 = vmul.f32 %v1373_v14, %v391_v18  ;;  %v420_v18 = vand.u32 2147483648, %v408_v12 }
 0x182   :  { %v412_v45 = vmul.f32 %v1375_v59, %v411_v46 }
 0x183   :  { %v393_v56 = vadd.f32 %v1373_v14, %v392_v43  ;;  %v421_v10 = vor.u32 1.1754944e-38, %v420_v18 }
 0x184   :  { %v413_v40 = vadd.f32 %v1375_v59, %v412_v45 }
 0x185   :  { %v397_v61 = vsel %vm396_vm11, %v1373_v14, %v393_v56 }
 0x186   :  { %v402_v63 = vsel %vm399_vm12, %v401_v60, %v397_v61  ;;  %v417_v43 = vsel %vm416_vm15, %v1375_v59, %v413_v40  ;;  %v2525_v40 = vld [vmem:[#allocation21_spill] sm:$0xff] }
 0x187   :  { %v425_v57 = vmul.f32 %v424_v62, %v402_v63  ;;  %v422_v14 = vsel %vm419_vm0, %v421_v10, %v417_v43 }
 0x189   :  { %v426_v48 = vadd.f32 %v425_v57, %v1959_v42 }
 0x18b   :  { %1376 = vtanh.f32 %v426_v48 }
 0x191   :  { %v1377_v58 = vpop.eup %1376 }
 0x192   :  { %v428_v54 = vsub.f32 %v1962_v16, %v1377_v58 }
 0x194   :  { %v429_v26 = vmul.f32 %v428_v54, %v422_v14 }
 0x196   :  { %v2020_v30 = vadd.f32 %v1377_v58, %v429_v26 }
 0x198   :  { %447 = vmatmul.f32.vlgmr.msrb.gmra.mxu1 %v2020_v30  ;;  %467 = vmatmul.f32.vlgmr.msra.gmra.mxu2 %v2020_v30 }
 0x199   :  { %487 = vmatmul.f32.vlgmr.msra.gmra.mxu3 %v2020_v30  ;;  %685 = vmatpush.msrb.mxu1 %v1715_v20 }
 0x19a   :  { %752 = vmatpush.msra.mxu2 %v1672_v0  ;;  %772 = vmatpush.msra.mxu3 %v1677_v2  ;;  %v2516_v0 = vld [vmem:[#allocation13_spill] sm:$0xff]  ;;  %v2518_v2 = vld [vmem:[#allocation19_spill] sm:$0xff] }
 0x19b   :  { %686 = vmatpush.msrb.mxu1 %v1723_v23 }
 0x19c   :  { %753 = vmatpush.msra.mxu2 %v1674_v1  ;;  %773 = vmatpush.msra.mxu3 %v1682_v4  ;;  %v2517_v1 = vld [vmem:[#allocation14_spill] sm:$0xff]  ;;  %v2520_v4 = vld [vmem:[#allocation16_spill] sm:$0xff] }
 0x19d   :  { %687 = vmatpush.msrb.mxu1 %v1736_v28 }
 0x19e   :  { %754 = vmatpush.msra.mxu2 %v1679_v3  ;;  %774 = vmatpush.msra.mxu3 %v1685_v5  ;;  %v2519_v3 = vld [vmem:[#allocation15_spill] sm:$0xff]  ;;  %v2521_v5 = vld [vmem:[#allocation20_spill] sm:$0xff] }
 0x19f   :  { %688 = vmatpush.msrb.mxu1 %v1745_v32 }
 0x1a0   :  { %755 = vmatpush.msra.mxu2 %v1687_v6  ;;  %775 = vmatpush.msra.mxu3 %v1691_v7  ;;  %v2522_v6 = vld [vmem:[#allocation17_spill] sm:$0xff]  ;;  %v2523_v7 = vld [vmem:[#allocation18_spill] sm:$0xff] }
 0x1a1   :  { %689 = vmatpush.msrb.mxu1 %v1754_v35 }
 0x1a2   :  { %756 = vmatpush.msra.mxu2 %v1693_v8  ;;  %776 = vmatpush.msra.mxu3 %v1697_v9  ;;  %v2524_v9 = vld [vmem:[#allocation22_spill] sm:$0xff] }
 0x1a3   :  { %690 = vmatpush.msrb.mxu1 %v1763_v38 }
 0x1a4   :  { %757 = vmatpush.msra.mxu2 %v1699_v11  ;;  %777 = vmatpush.msra.mxu3 %v1703_v13 }
 0x1a5   :  { %691 = vmatpush.msrb.mxu1 %v1773_v41 }
 0x1a6   :  { %758 = vmatpush.msra.mxu2 %v1705_v15  ;;  %778 = vmatpush.msra.mxu3 %v1709_v17 }
 0x1a7   :  { %692 = vmatpush.msrb.mxu1 %v1783_v44 }
 0x1a8   :  { %759 = vmatpush.msra.mxu2 %v1712_v19  ;;  %779 = vmatpush.msra.mxu3 %v1718_v21 }
 0x1a9   :  { %693 = vmatpush.msrb.mxu1 %v1796_v47 }
 0x1aa   :  { %760 = vmatpush.msra.mxu2 %v1720_v22  ;;  %780 = vmatpush.msra.mxu3 %v1726_v24 }
 0x1ab   :  { %694 = vmatpush.msrb.mxu1 %v1801_v49 }
 0x1ac   :  { %761 = vmatpush.msra.mxu2 %v1729_v25  ;;  %781 = vmatpush.msra.mxu3 %v1733_v27 }
 0x1ad   :  { %695 = vmatpush.msrb.mxu1 %v1804_v50 }
 0x1ae   :  { %762 = vmatpush.msra.mxu2 %v1738_v29  ;;  %782 = vmatpush.msra.mxu3 %v1742_v31 }
 0x1af   :  { %696 = vmatpush.msrb.mxu1 %v1810_v51 }
 0x1b0   :  { %763 = vmatpush.msra.mxu2 %v1747_v33  ;;  %783 = vmatpush.msra.mxu3 %v1752_v34 }
 0x1b1   :  { %697 = vmatpush.msrb.mxu1 %v1816_v52 }
 0x1b2   :  { %764 = vmatpush.msra.mxu2 %v1756_v36  ;;  %784 = vmatpush.msra.mxu3 %v1761_v37 }
 0x1b3   :  { %698 = vmatpush.msrb.mxu1 %v1822_v53 }
 0x1b4   :  { %765 = vmatpush.msra.mxu2 %v2516_v0  ;;  %785 = vmatpush.msra.mxu3 %v2517_v1 }
 0x1b5   :  { %699 = vmatpush.msrb.mxu1 %v2518_v2 }
 0x1b6   :  { %766 = vmatpush.msra.mxu2 %v2519_v3  ;;  %786 = vmatpush.msra.mxu3 %v2520_v4 }
 0x1b7   :  { %700 = vmatpush.msrb.mxu1 %v2521_v5 }
 0x1b8   :  { %767 = vmatpush.msra.mxu2 %v2522_v6  ;;  %787 = vmatpush.msra.mxu3 %v2523_v7 }
 0x215   :  { %v448_v8 = vpop.f32.mrf.mxu1 }
 0x216   :  { %v491_v11 = vadd.f32 %v448_v8, %v2524_v9 }
 0x218   :  { %v1332_v39 = vmul.f32 -1.442695, %v491_v11 }
 0x21a   :  { %1378 = vpow2.f32 %v1332_v39 }
 0x21b   :  { %v468_v16 = vpop.f32.mrf.mxu2 }
 0x21c   :  { %v511_v59 = vadd.f32 %v468_v16, %v2525_v40  ;;  %v488_v58 = vpop.f32.mrf.mxu3 }
 0x21d   :  { %v531_v11 = vadd.f32 %v1956_v55, %v488_v58 }
 0x21e   :  { %v1333_v45 = vmul.f32 -1.442695, %v511_v59 }
 0x220   :  { %v1379_v57 = vpop.eup %1378  ;;  %1380 = vpow2.f32 %v1333_v45 }
 0x221   :  { %v495_v12 = vadd.f32 1.0, %v1379_v57 }
 0x223   :  { %1382 = vrcp.f32 %v495_v12  ;;  %v507_v63 = vand.u32 2147483648, %v495_v12  ;;  %v505_v18 = vand.u32 2147483647, %v495_v12  ;;  %vm501_vm2 = vweird.f32 %v495_v12 }
 0x225   :  { %v508_v14 = vor.u32 1.1754944e-38, %v507_v63  ;;  %vm506_vm4 = vcmp.eq.f32.partialorder %v505_v18, 8.507059e+37 }
 0x226   :  { %v1381_v56 = vpop.eup %1380 }
 0x227   :  { %v515_v60 = vadd.f32 1.0, %v1381_v56 }
 0x229   :  { %v1383_v46 = vpop.eup %1382  ;;  %1384 = vrcp.f32 %v515_v60  ;;  %v527_v56 = vand.u32 2147483648, %v515_v60  ;;  %vm521_vm6 = vweird.f32 %v515_v60 }
 0x22a   :  { %v497_v62 = vmul.f32 %v1383_v46, %v495_v12  ;;  %vm502_vm1 = vweird.f32 %v1383_v46 }
 0x22b   :  { %vm503_vm3 = vmor %vm501_vm2, %vm502_vm1  ;;  %v528_v63 = vor.u32 1.1754944e-38, %v527_v56  ;;  %v2173_v56 = vld [vmem:[#allocation7 + $0x148] sm:$0xff] }
 0x22c   :  { %v498_v61 = vsub.f32 1.0, %v497_v62  ;;  %v525_v62 = vand.u32 2147483647, %v515_v60 }
 0x22e   :  { %v499_v48 = vmul.f32 %v1383_v46, %v498_v61  ;;  %vm526_vm8 = vcmp.eq.f32.partialorder %v525_v62, 8.507059e+37  ;;  %v2178_v62 = vld [vmem:[#allocation7 + $0x130] sm:$0xff] }
 0x22f   :  { %v1385_v43 = vpop.eup %1384 }
 0x230   :  { %v517_v10 = vmul.f32 %v1385_v43, %v515_v60  ;;  %v500_v54 = vadd.f32 %v1383_v46, %v499_v48  ;;  %vm522_vm5 = vweird.f32 %v1385_v43  ;;  %v2084_v60 = vld [vmem:[#allocation7 + $0x168] sm:$0xff] }
 0x231   :  { %vm523_vm7 = vmor %vm521_vm6, %vm522_vm5 }
 0x232   :  { %v518_v26 = vsub.f32 1.0, %v517_v10  ;;  %v504_v8 = vsel %vm503_vm3, %v1383_v46, %v500_v54  ;;  %v2094_v10 = vld [vmem:[#allocation7 + $0x158] sm:$0xff]  ;;  %v2101_v54 = vld [vmem:[#allocation7 + $0x140] sm:$0xff] }
 0x233   :  { %v509_v39 = vsel %vm506_vm4, %v508_v14, %v504_v8  ;;  %v2108_v14 = vld [vmem:[#allocation7 + $0x128] sm:$0xff] }
 0x234   :  { %v532_v16 = vmul.f32 %v531_v11, %v509_v39  ;;  %v519_v59 = vmul.f32 %v1385_v43, %v518_v26  ;;  %v2115_v26 = vld [vmem:[#allocation7 + $0x110] sm:$0xff] }
 0x236   :  { %v533_v45 = vadd.f32 %v532_v16, %v1959_v42  ;;  %v520_v57 = vadd.f32 %v1385_v43, %v519_v59 }
 0x238   :  { %1386 = vtanh.f32 %v533_v45  ;;  %v524_v12 = vsel %vm523_vm7, %v1385_v43, %v520_v57  ;;  %v2087_v43 = vld [vmem:[#allocation7 + $0x170] sm:$0xff]  ;;  %v2163_v45 = vld [vmem:[#allocation7 + $0x178] sm:$0xff]  ;;  %v2168_v57 = vld [vmem:[#allocation7 + $0x160] sm:$0xff] }
 0x239   :  { %v529_v48 = vsel %vm526_vm8, %v528_v63, %v524_v12  ;;  %v2183_v12 = vld [vmem:[#allocation7 + $0x118] sm:$0xff] }
 0x23a   :  { %v2192_v63 = vld [vmem:[#allocation7 + $0xf8] sm:$0xff] }
 0x23e   :  { %v1387_v61 = vpop.eup %1386 }
 0x23f   :  { %v535_v46 = vsub.f32 %v2020_v30, %v1387_v61  ;;  %v2091_v30 = vld [vmem:[#allocation7 + $0x150] sm:$0xff] }
 0x241   :  { %v536_v18 = vmul.f32 %v535_v46, %v529_v48  ;;  %v2195_v46 = vld [vmem:[#allocation7 + $0xe8] sm:$0xff]  ;;  %v2198_v48 = vld [vmem:[#allocation7 + $0xd8] sm:$0xff] }
 0x243   :  { %v2078_v58 = vadd.f32 %v1387_v61, %v536_v18  ;;  %v2188_v61 = vld [vmem:[#allocation7 + $0x100] sm:$0xff] }
 0x244   :  { %v2201_v18 = vld [vmem:[#allocation7 + $0xe0] sm:$0xff] }
 0x245   :  { %554 = vmatmul.f32.vlgmr.msra.gmra.mxu0 %v2078_v58  ;;  %574 = vmatmul.f32.vlgmr.msra.gmra.mxu1 %v2078_v58 }
 0x246   :  { %594 = vmatmul.f32.vlgmr.msrb.gmra.mxu2 %v2078_v58  ;;  %792 = vmatpush.msra.mxu0 %v1715_v20  ;;  %v2098_v20 = vld [vmem:[#allocation7 + $0x138] sm:$0xff] }
 0x247   :  { %859 = vmatpush.msra.mxu1 %v2084_v60  ;;  %879 = vmatpush.msrb.mxu2 %v2087_v43 }
 0x248   :  { %793 = vmatpush.msra.mxu0 %v1723_v23  ;;  %v2105_v23 = vld [vmem:[#allocation7 + $0x120] sm:$0xff] }
 0x249   :  { %860 = vmatpush.msra.mxu1 %v2091_v30  ;;  %880 = vmatpush.msrb.mxu2 %v2094_v10 }
 0x24a   :  { %794 = vmatpush.msra.mxu0 %v1736_v28  ;;  %v2112_v28 = vld [vmem:[#allocation7 + $0x108] sm:$0xff] }
 0x24b   :  { %861 = vmatpush.msra.mxu1 %v2098_v20  ;;  %881 = vmatpush.msrb.mxu2 %v2101_v54 }
 0x24c   :  { %795 = vmatpush.msra.mxu0 %v1745_v32  ;;  %v2119_v32 = vld [vmem:[#allocation7 + $0xf0] sm:$0xff] }
 0x24d   :  { %862 = vmatpush.msra.mxu1 %v2105_v23  ;;  %882 = vmatpush.msrb.mxu2 %v2108_v14 }
 0x24e   :  { %796 = vmatpush.msra.mxu0 %v1754_v35 }
 0x24f   :  { %863 = vmatpush.msra.mxu1 %v2112_v28  ;;  %883 = vmatpush.msrb.mxu2 %v2115_v26 }
 0x250   :  { %797 = vmatpush.msra.mxu0 %v1763_v38 }
 0x251   :  { %864 = vmatpush.msra.mxu1 %v2119_v32  ;;  %884 = vmatpush.msrb.mxu2 %v1703_v13 }
 0x252   :  { %798 = vmatpush.msra.mxu0 %v1773_v41 }
 0x253   :  { %865 = vmatpush.msra.mxu1 %v1705_v15  ;;  %885 = vmatpush.msrb.mxu2 %v1709_v17 }
 0x254   :  { %799 = vmatpush.msra.mxu0 %v1783_v44 }
 0x255   :  { %866 = vmatpush.msra.mxu1 %v1712_v19  ;;  %886 = vmatpush.msrb.mxu2 %v1718_v21 }
 0x256   :  { %800 = vmatpush.msra.mxu0 %v1796_v47 }
 0x257   :  { %867 = vmatpush.msra.mxu1 %v1720_v22  ;;  %887 = vmatpush.msrb.mxu2 %v1726_v24 }
 0x258   :  { %801 = vmatpush.msra.mxu0 %v1801_v49 }
 0x259   :  { %868 = vmatpush.msra.mxu1 %v1729_v25  ;;  %888 = vmatpush.msrb.mxu2 %v1733_v27 }
 0x25a   :  { %802 = vmatpush.msra.mxu0 %v1804_v50 }
 0x25b   :  { %869 = vmatpush.msra.mxu1 %v1738_v29  ;;  %889 = vmatpush.msrb.mxu2 %v1742_v31 }
 0x25c   :  { %803 = vmatpush.msra.mxu0 %v1810_v51 }
 0x25d   :  { %870 = vmatpush.msra.mxu1 %v1747_v33  ;;  %890 = vmatpush.msrb.mxu2 %v1752_v34 }
 0x25e   :  { %804 = vmatpush.msra.mxu0 %v1816_v52 }
 0x25f   :  { %871 = vmatpush.msra.mxu1 %v1756_v36  ;;  %891 = vmatpush.msrb.mxu2 %v1761_v37 }
 0x260   :  { %805 = vmatpush.msra.mxu0 %v1822_v53 }
 0x261   :  { %872 = vmatpush.msra.mxu1 %v2516_v0  ;;  %892 = vmatpush.msrb.mxu2 %v2517_v1 }
 0x262   :  { %806 = vmatpush.msra.mxu0 %v2518_v2 }
 0x263   :  { %873 = vmatpush.msra.mxu1 %v2519_v3  ;;  %893 = vmatpush.msrb.mxu2 %v2520_v4 }
 0x264   :  { %807 = vmatpush.msra.mxu0 %v2521_v5 }
 0x265   :  { %874 = vmatpush.msra.mxu1 %v2522_v6  ;;  %894 = vmatpush.msrb.mxu2 %v2523_v7 }
 0x2c2   :  { %v555_v13 = vpop.f32.mrf.mxu0  ;;  %v575_v15 = vpop.f32.mrf.mxu1 }
 0x2c3   :  { %v598_v17 = vadd.f32 %v555_v13, %v2524_v9  ;;  %v618_v19 = vadd.f32 %v575_v15, %v2525_v40  ;;  %v2207_v13 = vld [vmem:[#allocation7 + $0xc0] sm:$0xff]  ;;  %v2210_v15 = vld [vmem:[#allocation7 + $0xc8] sm:$0xff] }
 0x2c5   :  { %v1334_v21 = vmul.f32 -1.442695, %v598_v17  ;;  %v1335_v22 = vmul.f32 -1.442695, %v618_v19  ;;  %v2213_v17 = vld [vmem:[#allocation7 + $0xb8] sm:$0xff]  ;;  %v2216_v19 = vld [vmem:[#allocation7 + $0xa8] sm:$0xff] }
 0x2c7   :  { %1388 = vpow2.f32 %v1334_v21  ;;  %v2219_v21 = vld [vmem:[#allocation7 + $0xb0] sm:$0xff] }
 0x2c8   :  { %1390 = vpow2.f32 %v1335_v22  ;;  %v2222_v22 = vld [vmem:[#allocation7 + $0xa0] sm:$0xff] }
 0x2c9   :  { %v595_v44 = vpop.f32.mrf.mxu2 }
 0x2ca   :  { %v638_v52 = vadd.f32 %v1956_v55, %v595_v44  ;;  %v2261_v44 = vld [vmem:[#allocation7 + $0x30] sm:$0xff] }
 0x2cb   :  { %2526 = vst [vmem:[#allocation13_spill] sm:$0xff] %v2261_v44 }
 0x2cd   :  { %v1389_v24 = vpop.eup %1388 }
 0x2ce   :  { %v1391_v25 = vpop.eup %1390  ;;  %v602_v27 = vadd.f32 1.0, %v1389_v24  ;;  %v2225_v24 = vld [vmem:[#allocation7 + $0x90] sm:$0xff] }
 0x2cf   :  { %v622_v29 = vadd.f32 1.0, %v1391_v25  ;;  %v2228_v25 = vld [vmem:[#allocation7 + $0x98] sm:$0xff] }
 0x2d0   :  { %1392 = vrcp.f32 %v602_v27  ;;  %v614_v37 = vand.u32 2147483648, %v602_v27  ;;  %v612_v41 = vand.u32 2147483647, %v602_v27  ;;  %vm608_vm10 = vweird.f32 %v602_v27 }
 0x2d1   :  { %1394 = vrcp.f32 %v622_v29  ;;  %v634_v4 = vand.u32 2147483648, %v622_v29  ;;  %vm628_vm14 = vweird.f32 %v622_v29  ;;  %v632_v5 = vand.u32 2147483647, %v622_v29 }
 0x2d2   :  { %v615_v50 = vor.u32 1.1754944e-38, %v614_v37  ;;  %vm613_vm12 = vcmp.eq.f32.partialorder %v612_v41, 8.507059e+37  ;;  %v2252_v37 = vld [vmem:[#allocation7 + $0x48] sm:$0xff]  ;;  %v2258_v41 = vld [vmem:[#allocation7 + $0x40] sm:$0xff] }
 0x2d3   :  { %v635_v8 = vor.u32 1.1754944e-38, %v634_v4  ;;  %vm633_vm0 = vcmp.eq.f32.partialorder %v632_v5, 8.507059e+37 }
 0x2d6   :  { %v1393_v31 = vpop.eup %1392 }
 0x2d7   :  { %v1395_v33 = vpop.eup %1394  ;;  %v604_v34 = vmul.f32 %v1393_v31, %v602_v27  ;;  %vm609_vm9 = vweird.f32 %v1393_v31  ;;  %v2231_v27 = vld [vmem:[#allocation7 + $0x88] sm:$0xff] }
 0x2d8   :  { %v624_v36 = vmul.f32 %v1395_v33, %v622_v29  ;;  %vm610_vm11 = vmor %vm608_vm10, %vm609_vm9  ;;  %vm629_vm13 = vweird.f32 %v1395_v33  ;;  %v2234_v29 = vld [vmem:[#allocation7 + $0x78] sm:$0xff] }
 0x2d9   :  { %v605_v35 = vsub.f32 1.0, %v604_v34  ;;  %vm630_vm15 = vmor %vm628_vm14, %vm629_vm13  ;;  %v2243_v34 = vld [vmem:[#allocation7 + $0x60] sm:$0xff] }
 0x2da   :  { %v625_v49 = vsub.f32 1.0, %v624_v36  ;;  %v2249_v36 = vld [vmem:[#allocation7 + $0x58] sm:$0xff] }
 0x2db   :  { %v606_v38 = vmul.f32 %v1393_v31, %v605_v35  ;;  %v2246_v35 = vld [vmem:[#allocation7 + $0x68] sm:$0xff] }
 0x2dc   :  { %v626_v1 = vmul.f32 %v1395_v33, %v625_v49  ;;  %v2267_v49 = vld [vmem:[#allocation7 + $0x28] sm:$0xff] }
 0x2dd   :  { %v607_v47 = vadd.f32 %v1393_v31, %v606_v38  ;;  %v2255_v38 = vld [vmem:[#allocation7 + $0x50] sm:$0xff]  ;;  %2528 = vst [vmem:[#allocation19_spill] sm:$0xff] %v2267_v49 }
 0x2de   :  { %v627_v3 = vadd.f32 %v1395_v33, %v626_v1 }
 0x2df   :  { %v611_v51 = vsel %vm610_vm11, %v1393_v31, %v607_v47  ;;  %v2237_v31 = vld [vmem:[#allocation7 + $0x80] sm:$0xff]  ;;  %v2264_v47 = vld [vmem:[#allocation7 + $0x38] sm:$0xff] }
 0x2e0   :  { %v616_v53 = vsel %vm613_vm12, %v615_v50, %v611_v51  ;;  %v631_v6 = vsel %vm630_vm15, %v1395_v33, %v627_v3  ;;  %v2240_v33 = vld [vmem:[#allocation7 + $0x70] sm:$0xff]  ;;  %2527 = vst [vmem:[#allocation14_spill] sm:$0xff] %v2264_v47  ;;  %v2270_v50 = vld [vmem:[#allocation7 + $0x18] sm:$0xff]  ;;  %v2273_v51 = vld [vmem:[#allocation7 + $0x20] sm:$0xff] }
 0x2e1   :  { %v639_v0 = vmul.f32 %v638_v52, %v616_v53  ;;  %v636_v39 = vsel %vm633_vm0, %v635_v8, %v631_v6  ;;  %2529 = vst [vmem:[#allocation15_spill] sm:$0xff] %v2270_v50  ;;  %v2276_v52 = vld [vmem:[#allocation7 + $0x10] sm:$0xff]  ;;  %v2279_v53 = vld [vmem:[#allocation7] sm:$0xff] }
 0x2e2   :  { %2530 = vst [vmem:[#allocation16_spill] sm:$0xff] %v2273_v51 }
 0x2e3   :  { %v640_v2 = vadd.f32 %v639_v0, %v1959_v42  ;;  %2531 = vst [vmem:[#allocation20_spill] sm:$0xff] %v2276_v52  ;;  %v2282_v0 = vld [vmem:[#allocation7 + $0x8] sm:$0xff] }
 0x2e4   :  { %2532 = vst [vmem:[#allocation17_spill] sm:$0xff] %v2279_v53 }
 0x2e5   :  { %1396 = vtanh.f32 %v640_v2  ;;  %2533 = vst [vmem:[#allocation18_spill] sm:$0xff] %v2282_v0 }
 0x2eb   :  { %v1397_v7 = vpop.eup %1396 }
 0x2ec   :  { %v642_v11 = vsub.f32 %v2078_v58, %v1397_v7  ;;  %v2204_v58 = vld [vmem:[#allocation7 + $0xd0] sm:$0xff] }
 0x2ee   :  { %v643_v16 = vmul.f32 %v642_v11, %v636_v39 }
 0x2f0   :  { %v2158_v59 = vadd.f32 %v1397_v7, %v643_v16 }
 0x2f2   :  { %661 = vmatmul.f32.vlgmr.msrb.gmra.mxu3 %v2158_v59  ;;  %681 = vmatmul.f32.vlgmr.msrb.gmra.mxu0 %v2158_v59 }
 0x2f3   :  { %701 = vmatmul.f32.vlgmr.msrb.gmra.mxu1 %v2158_v59  ;;  %899 = vmatpush.msrb.mxu3 %v2163_v45 }
 0x2f4   :  { %966 = vmatpush.msrb.mxu0 %v2084_v60  ;;  %986 = vmatpush.msrb.mxu1 %v2087_v43 }
 0x2f5   :  { %900 = vmatpush.msrb.mxu3 %v2168_v57 }
 0x2f6   :  { %967 = vmatpush.msrb.mxu0 %v2091_v30  ;;  %987 = vmatpush.msrb.mxu1 %v2094_v10 }
 0x2f7   :  { %901 = vmatpush.msrb.mxu3 %v2173_v56 }
 0x2f8   :  { %968 = vmatpush.msrb.mxu0 %v2098_v20  ;;  %988 = vmatpush.msrb.mxu1 %v2101_v54 }
 0x2f9   :  { %902 = vmatpush.msrb.mxu3 %v2178_v62 }
 0x2fa   :  { %969 = vmatpush.msrb.mxu0 %v2105_v23  ;;  %989 = vmatpush.msrb.mxu1 %v2108_v14 }
 0x2fb   :  { %903 = vmatpush.msrb.mxu3 %v2183_v12 }
 0x2fc   :  { %970 = vmatpush.msrb.mxu0 %v2112_v28  ;;  %990 = vmatpush.msrb.mxu1 %v2115_v26 }
 0x2fd   :  { %904 = vmatpush.msrb.mxu3 %v2188_v61 }
 0x2fe   :  { %971 = vmatpush.msrb.mxu0 %v2119_v32  ;;  %991 = vmatpush.msrb.mxu1 %v2192_v63 }
 0x2ff   :  { %905 = vmatpush.msrb.mxu3 %v2195_v46 }
 0x300   :  { %972 = vmatpush.msrb.mxu0 %v2198_v48  ;;  %992 = vmatpush.msrb.mxu1 %v2201_v18 }
 0x301   :  { %906 = vmatpush.msrb.mxu3 %v2204_v58 }
 0x302   :  { %973 = vmatpush.msrb.mxu0 %v2207_v13  ;;  %993 = vmatpush.msrb.mxu1 %v2210_v15 }
 0x303   :  { %907 = vmatpush.msrb.mxu3 %v2213_v17 }
 0x304   :  { %974 = vmatpush.msrb.mxu0 %v2216_v19  ;;  %994 = vmatpush.msrb.mxu1 %v2219_v21 }
 0x305   :  { %908 = vmatpush.msrb.mxu3 %v2222_v22 }
 0x306   :  { %975 = vmatpush.msrb.mxu0 %v2225_v24  ;;  %995 = vmatpush.msrb.mxu1 %v2228_v25 }
 0x307   :  { %909 = vmatpush.msrb.mxu3 %v2231_v27 }
 0x308   :  { %976 = vmatpush.msrb.mxu0 %v2234_v29  ;;  %996 = vmatpush.msrb.mxu1 %v2237_v31 }
 0x309   :  { %910 = vmatpush.msrb.mxu3 %v2240_v33 }
 0x30a   :  { %977 = vmatpush.msrb.mxu0 %v2243_v34  ;;  %997 = vmatpush.msrb.mxu1 %v2246_v35 }
 0x30b   :  { %911 = vmatpush.msrb.mxu3 %v2249_v36 }
 0x30c   :  { %978 = vmatpush.msrb.mxu0 %v2252_v37  ;;  %998 = vmatpush.msrb.mxu1 %v2255_v38 }
 0x30d   :  { %912 = vmatpush.msrb.mxu3 %v2258_v41 }
 0x30e   :  { %979 = vmatpush.msrb.mxu0 %v2261_v44  ;;  %999 = vmatpush.msrb.mxu1 %v2264_v47 }
 0x30f   :  { %913 = vmatpush.msrb.mxu3 %v2267_v49 }
 0x310   :  { %980 = vmatpush.msrb.mxu0 %v2270_v50  ;;  %1000 = vmatpush.msrb.mxu1 %v2273_v51 }
 0x311   :  { %914 = vmatpush.msrb.mxu3 %v2276_v52 }
 0x312   :  { %981 = vmatpush.msrb.mxu0 %v2279_v53  ;;  %1001 = vmatpush.msrb.mxu1 %v2282_v0 }
 0x36f   :  { %v682_v1 = vpop.f32.mrf.mxu0 }
 0x370   :  { %v725_v2 = vadd.f32 %v682_v1, %v2525_v40  ;;  %v702_v40 = vpop.f32.mrf.mxu1 }
 0x372   :  { %v1337_v3 = vmul.f32 -1.442695, %v725_v2 }
 0x374   :  { %1398 = vpow2.f32 %v1337_v3 }
 0x375   :  { %v662_v4 = vpop.f32.mrf.mxu3 }
 0x376   :  { %v705_v5 = vadd.f32 %v662_v4, %v2524_v9 }
 0x378   :  { %v1336_v6 = vmul.f32 -1.442695, %v705_v5 }
 0x37a   :  { %1400 = vpow2.f32 %v1336_v6  ;;  %v1399_v7 = vpop.eup %1398  ;;  %v745_v6 = vadd.f32 %v1956_v55, %v702_v40 }
 0x37b   :  { %v729_v11 = vadd.f32 1.0, %v1399_v7 }
 0x37d   :  { %vm735_vm6 = vweird.f32 %v729_v11  ;;  %v739_v44 = vand.u32 2147483647, %v729_v11 }
 0x37f   :  { %vm740_vm8 = vcmp.eq.f32.partialorder %v739_v44, 8.507059e+37  ;;  %v2536_v44 = vld [vmem:[#allocation19_spill] sm:$0xff] }
 0x380   :  { %v1401_v8 = vpop.eup %1400 }
 0x381   :  { %v709_v39 = vadd.f32 1.0, %v1401_v8 }
 0x383   :  { %1402 = vrcp.f32 %v709_v39  ;;  %v721_v50 = vand.u32 2147483648, %v709_v39  ;;  %v719_v2 = vand.u32 2147483647, %v709_v39  ;;  %vm715_vm2 = vweird.f32 %v709_v39 }
 0x384   :  { %1404 = vrcp.f32 %v729_v11 }
 0x385   :  { %v722_v5 = vor.u32 1.1754944e-38, %v721_v50  ;;  %vm720_vm4 = vcmp.eq.f32.partialorder %v719_v2, 8.507059e+37  ;;  %v2541_v2 = vld [vmem:[#allocation18_spill] sm:$0xff] }
 0x389   :  { %v1403_v16 = vpop.eup %1402 }
 0x38a   :  { %v1405_v53 = vpop.eup %1404  ;;  %v711_v52 = vmul.f32 %v1403_v16, %v709_v39  ;;  %vm716_vm1 = vweird.f32 %v1403_v16 }
 0x38b   :  { %v731_v51 = vmul.f32 %v1405_v53, %v729_v11  ;;  %vm717_vm3 = vmor %vm715_vm2, %vm716_vm1  ;;  %vm736_vm5 = vweird.f32 %v1405_v53 }
 0x38c   :  { %v712_v0 = vsub.f32 1.0, %v711_v52  ;;  %vm737_vm7 = vmor %vm735_vm6, %vm736_vm5 }
 0x38d   :  { %v732_v3 = vsub.f32 1.0, %v731_v51 }
 0x38e   :  { %v713_v1 = vmul.f32 %v1403_v16, %v712_v0  ;;  %v741_v0 = vand.u32 2147483648, %v729_v11  ;;  %v2540_v11 = vld [vmem:[#allocation17_spill] sm:$0xff] }
 0x38f   :  { %v733_v49 = vmul.f32 %v1405_v53, %v732_v3 }
 0x390   :  { %v714_v4 = vadd.f32 %v1403_v16, %v713_v1  ;;  %v742_v1 = vor.u32 1.1754944e-38, %v741_v0 }
 0x391   :  { %v734_v47 = vadd.f32 %v1405_v53, %v733_v49  ;;  %v2538_v49 = vld [vmem:[#allocation16_spill] sm:$0xff] }
 0x392   :  { %v718_v7 = vsel %vm717_vm3, %v1403_v16, %v714_v4 }
 0x393   :  { %v723_v8 = vsel %vm720_vm4, %v722_v5, %v718_v7  ;;  %v738_v39 = vsel %vm737_vm7, %v1405_v53, %v734_v47  ;;  %v2537_v47 = vld [vmem:[#allocation15_spill] sm:$0xff]  ;;  %v2539_v53 = vld [vmem:[#allocation20_spill] sm:$0xff]  ;;  %v2542_v5 = vld [vmem:[#allocation22_spill] sm:$0xff] }
 0x394   :  { %v746_v9 = vmul.f32 %v745_v6, %v723_v8  ;;  %v743_v40 = vsel %vm740_vm8, %v742_v1, %v738_v39  ;;  %v2543_v7 = vld [vmem:[#allocation21_spill] sm:$0xff] }
 0x396   :  { %v747_v52 = vadd.f32 %v746_v9, %v1959_v42  ;;  %v2534_v9 = vld [vmem:[#allocation13_spill] sm:$0xff] }
 0x398   :  { %1406 = vtanh.f32 %v747_v52 }
 0x39e   :  { %v1407_v51 = vpop.eup %1406 }
 0x39f   :  { %v749_v55 = vsub.f32 %v2158_v59, %v1407_v51  ;;  %v2535_v59 = vld [vmem:[#allocation14_spill] sm:$0xff] }
 0x3a1   :  { %v750_v50 = vmul.f32 %v749_v55, %v743_v40 }
 0x3a3   :  { %v2290_v16 = vadd.f32 %v1407_v51, %v750_v50 }
 0x3a5   :  { %768 = vmatmul.f32.vlgmr.msra.gmra.mxu2 %v2290_v16  ;;  %788 = vmatmul.f32.vlgmr.msra.gmra.mxu3 %v2290_v16 }
 0x3a6   :  { %808 = vmatmul.f32.vlgmr.msra.gmra.mxu0 %v2290_v16  ;;  %1006 = vmatpush.msra.mxu2 %v2163_v45 }
 0x3a7   :  { %1073 = vmatpush.msra.mxu3 %v2084_v60  ;;  %1093 = vmatpush.msra.mxu0 %v2087_v43 }
 0x3a8   :  { %1007 = vmatpush.msra.mxu2 %v2168_v57 }
 0x3a9   :  { %1074 = vmatpush.msra.mxu3 %v2091_v30  ;;  %1094 = vmatpush.msra.mxu0 %v2094_v10 }
 0x3aa   :  { %1008 = vmatpush.msra.mxu2 %v2173_v56 }
 0x3ab   :  { %1075 = vmatpush.msra.mxu3 %v2098_v20  ;;  %1095 = vmatpush.msra.mxu0 %v2101_v54 }
 0x3ac   :  { %1009 = vmatpush.msra.mxu2 %v2178_v62 }
 0x3ad   :  { %1076 = vmatpush.msra.mxu3 %v2105_v23  ;;  %1096 = vmatpush.msra.mxu0 %v2108_v14 }
 0x3ae   :  { %1010 = vmatpush.msra.mxu2 %v2183_v12 }
 0x3af   :  { %1077 = vmatpush.msra.mxu3 %v2112_v28  ;;  %1097 = vmatpush.msra.mxu0 %v2115_v26 }
 0x3b0   :  { %1011 = vmatpush.msra.mxu2 %v2188_v61 }
 0x3b1   :  { %1078 = vmatpush.msra.mxu3 %v2119_v32  ;;  %1098 = vmatpush.msra.mxu0 %v2192_v63 }
 0x3b2   :  { %1012 = vmatpush.msra.mxu2 %v2195_v46 }
 0x3b3   :  { %1079 = vmatpush.msra.mxu3 %v2198_v48  ;;  %1099 = vmatpush.msra.mxu0 %v2201_v18 }
 0x3b4   :  { %1013 = vmatpush.msra.mxu2 %v2204_v58 }
 0x3b5   :  { %1080 = vmatpush.msra.mxu3 %v2207_v13  ;;  %1100 = vmatpush.msra.mxu0 %v2210_v15 }
 0x3b6   :  { %1014 = vmatpush.msra.mxu2 %v2213_v17 }
 0x3b7   :  { %1081 = vmatpush.msra.mxu3 %v2216_v19  ;;  %1101 = vmatpush.msra.mxu0 %v2219_v21 }
 0x3b8   :  { %1015 = vmatpush.msra.mxu2 %v2222_v22 }
 0x3b9   :  { %1082 = vmatpush.msra.mxu3 %v2225_v24  ;;  %1102 = vmatpush.msra.mxu0 %v2228_v25 }
 0x3ba   :  { %1016 = vmatpush.msra.mxu2 %v2231_v27 }
 0x3bb   :  { %1083 = vmatpush.msra.mxu3 %v2234_v29  ;;  %1103 = vmatpush.msra.mxu0 %v2237_v31 }
 0x3bc   :  { %1017 = vmatpush.msra.mxu2 %v2240_v33 }
 0x3bd   :  { %1084 = vmatpush.msra.mxu3 %v2243_v34  ;;  %1104 = vmatpush.msra.mxu0 %v2246_v35 }
 0x3be   :  { %1018 = vmatpush.msra.mxu2 %v2249_v36 }
 0x3bf   :  { %1085 = vmatpush.msra.mxu3 %v2252_v37  ;;  %1105 = vmatpush.msra.mxu0 %v2255_v38 }
 0x3c0   :  { %1019 = vmatpush.msra.mxu2 %v2258_v41 }
 0x3c1   :  { %1086 = vmatpush.msra.mxu3 %v2534_v9  ;;  %1106 = vmatpush.msra.mxu0 %v2535_v59 }
 0x3c2   :  { %1020 = vmatpush.msra.mxu2 %v2536_v44 }
 0x3c3   :  { %1087 = vmatpush.msra.mxu3 %v2537_v47  ;;  %1107 = vmatpush.msra.mxu0 %v2538_v49 }
 0x3c4   :  { %1021 = vmatpush.msra.mxu2 %v2539_v53 }
 0x3c5   :  { %1088 = vmatpush.msra.mxu3 %v2540_v11  ;;  %1108 = vmatpush.msra.mxu0 %v2541_v2 }
 0x428   :  { %v769_v4 = vpop.f32.mrf.mxu2  ;;  %v789_v3 = vpop.f32.mrf.mxu3 }
 0x429   :  { %v812_v6 = vadd.f32 %v769_v4, %v2542_v5  ;;  %v832_v8 = vadd.f32 %v789_v3, %v2543_v7  ;;  %v809_v3 = vpop.f32.mrf.mxu0 }
 0x42b   :  { %v1338_v52 = vmul.f32 -1.442695, %v812_v6  ;;  %v1339_v0 = vmul.f32 -1.442695, %v832_v8 }
 0x42d   :  { %1408 = vpow2.f32 %v1338_v52 }
 0x42e   :  { %1410 = vpow2.f32 %v1339_v0  ;;  %v2345_v0 = vld [vmem:[#allocation8] ss:$0 sm:$0xff] }
 0x433   :  { %v1409_v39 = vpop.eup %1408 }
 0x434   :  { %v1411_v51 = vpop.eup %1410  ;;  %v816_v1 = vadd.f32 1.0, %v1409_v39  ;;  %v852_v39 = vadd.f32 %v2345_v0, %v809_v3 }
 0x435   :  { %v836_v55 = vadd.f32 1.0, %v1411_v51 }
 0x436   :  { %1412 = vrcp.f32 %v816_v1  ;;  %v828_v53 = vand.u32 2147483648, %v816_v1  ;;  %v826_v4 = vand.u32 2147483647, %v816_v1  ;;  %vm822_vm10 = vweird.f32 %v816_v1 }
 0x437   :  { %1414 = vrcp.f32 %v836_v55  ;;  %v848_v59 = vand.u32 2147483648, %v836_v55  ;;  %vm842_vm14 = vweird.f32 %v836_v55 }
 0x438   :  { %v829_v8 = vor.u32 1.1754944e-38, %v828_v53  ;;  %vm827_vm12 = vcmp.eq.f32.partialorder %v826_v4, 8.507059e+37 }
 0x43c   :  { %v1413_v40 = vpop.eup %1412 }
 0x43d   :  { %v1415_v50 = vpop.eup %1414  ;;  %v818_v11 = vmul.f32 %v1413_v40, %v816_v1  ;;  %vm823_vm9 = vweird.f32 %v1413_v40  ;;  %v849_v1 = vor.u32 1.1754944e-38, %v848_v59 }
 0x43e   :  { %v838_v49 = vmul.f32 %v1415_v50, %v836_v55  ;;  %vm824_vm11 = vmor %vm822_vm10, %vm823_vm9  ;;  %vm843_vm13 = vweird.f32 %v1415_v50 }
 0x43f   :  { %v819_v2 = vsub.f32 1.0, %v818_v11  ;;  %vm844_vm15 = vmor %vm842_vm14, %vm843_vm13 }
 0x440   :  { %v839_v52 = vsub.f32 1.0, %v838_v49 }
 0x441   :  { %v820_v47 = vmul.f32 %v1413_v40, %v819_v2 }
 0x442   :  { %v840_v11 = vmul.f32 %v1415_v50, %v839_v52 }
 0x443   :  { %v821_v6 = vadd.f32 %v1413_v40, %v820_v47  ;;  %v846_v47 = vand.u32 2147483647, %v836_v55 }
 0x444   :  { %v841_v2 = vadd.f32 %v1415_v50, %v840_v11 }
 0x445   :  { %v825_v51 = vsel %vm824_vm11, %v1413_v40, %v821_v6  ;;  %vm847_vm0 = vcmp.eq.f32.partialorder %v846_v47, 8.507059e+37 }
 0x446   :  { %v830_v7 = vsel %vm827_vm12, %v829_v8, %v825_v51  ;;  %v845_v53 = vsel %vm844_vm15, %v1415_v50, %v841_v2 }
 0x447   :  { %v853_v5 = vmul.f32 %v852_v39, %v830_v7  ;;  %v850_v40 = vsel %vm847_vm0, %v849_v1, %v845_v53 }
 0x449   :  { %v854_v44 = vadd.f32 %v853_v5, %v1959_v42 }
 0x44b   :  { %1416 = vtanh.f32 %v854_v44 }
 0x451   :  { %v1417_v49 = vpop.eup %1416 }
 0x452   :  { %v856_v3 = vsub.f32 %v2290_v16, %v1417_v49 }
 0x454   :  { %v857_v4 = vmul.f32 %v856_v3, %v850_v40 }
 0x456   :  { %v2350_v6 = vadd.f32 %v1417_v49, %v857_v4 }
 0x458   :  { %875 = vmatmul.f32.vlgmr.msra.gmra.mxu1 %v2350_v6  ;;  %895 = vmatmul.f32.vlgmr.msrb.gmra.mxu2 %v2350_v6 }
 0x459   :  { %915 = vmatmul.f32.vlgmr.msrb.gmra.mxu3 %v2350_v6  ;;  %1113 = vmatpush.msra.mxu1 %v2163_v45 }
 0x45a   :  { %1180 = vmatpush.msrb.mxu2 %v2084_v60  ;;  %1200 = vmatpush.msrb.mxu3 %v2087_v43  ;;  %v2544_v60 = vld [vmem:[#allocation14_spill] sm:$0xff]  ;;  %v2545_v43 = vld [vmem:[#allocation19_spill] sm:$0xff] }
 0x45b   :  { %1114 = vmatpush.msra.mxu1 %v2168_v57 }
 0x45c   :  { %1181 = vmatpush.msrb.mxu2 %v2091_v30  ;;  %1201 = vmatpush.msrb.mxu3 %v2094_v10  ;;  %v2546_v30 = vld [vmem:[#allocation15_spill] sm:$0xff]  ;;  %v2547_v10 = vld [vmem:[#allocation16_spill] sm:$0xff] }
 0x45d   :  { %1115 = vmatpush.msra.mxu1 %v2173_v56 }
 0x45e   :  { %1182 = vmatpush.msrb.mxu2 %v2098_v20  ;;  %1202 = vmatpush.msrb.mxu3 %v2101_v54  ;;  %v2548_v20 = vld [vmem:[#allocation20_spill] sm:$0xff]  ;;  %v2549_v54 = vld [vmem:[#allocation17_spill] sm:$0xff] }
 0x45f   :  { %1116 = vmatpush.msra.mxu1 %v2178_v62 }
 0x460   :  { %1183 = vmatpush.msrb.mxu2 %v2105_v23  ;;  %1203 = vmatpush.msrb.mxu3 %v2108_v14  ;;  %v2550_v23 = vld [vmem:[#allocation18_spill] sm:$0xff] }
 0x461   :  { %1117 = vmatpush.msra.mxu1 %v2183_v12 }
 0x462   :  { %1184 = vmatpush.msrb.mxu2 %v2112_v28  ;;  %1204 = vmatpush.msrb.mxu3 %v2115_v26  ;;  %v2551_v28 = vld [vmem:[#allocation22_spill] sm:$0xff] }
 0x463   :  { %1118 = vmatpush.msra.mxu1 %v2188_v61 }
 0x464   :  { %1185 = vmatpush.msrb.mxu2 %v2119_v32  ;;  %1205 = vmatpush.msrb.mxu3 %v2192_v63 }
 0x465   :  { %1119 = vmatpush.msra.mxu1 %v2195_v46 }
 0x466   :  { %1186 = vmatpush.msrb.mxu2 %v2198_v48  ;;  %1206 = vmatpush.msrb.mxu3 %v2201_v18  ;;  %v2552_v48 = vld [vmem:[#allocation21_spill] sm:$0xff] }
 0x467   :  { %1120 = vmatpush.msra.mxu1 %v2204_v58 }
 0x468   :  { %1187 = vmatpush.msrb.mxu2 %v2207_v13  ;;  %1207 = vmatpush.msrb.mxu3 %v2210_v15 }
 0x469   :  { %1121 = vmatpush.msra.mxu1 %v2213_v17 }
 0x46a   :  { %1188 = vmatpush.msrb.mxu2 %v2216_v19  ;;  %1208 = vmatpush.msrb.mxu3 %v2219_v21 }
 0x46b   :  { %1122 = vmatpush.msra.mxu1 %v2222_v22 }
 0x46c   :  { %1189 = vmatpush.msrb.mxu2 %v2225_v24  ;;  %1209 = vmatpush.msrb.mxu3 %v2228_v25 }
 0x46d   :  { %1123 = vmatpush.msra.mxu1 %v2231_v27 }
 0x46e   :  { %1190 = vmatpush.msrb.mxu2 %v2234_v29  ;;  %1210 = vmatpush.msrb.mxu3 %v2237_v31 }
 0x46f   :  { %1124 = vmatpush.msra.mxu1 %v2240_v33 }
 0x470   :  { %1191 = vmatpush.msrb.mxu2 %v2243_v34  ;;  %1211 = vmatpush.msrb.mxu3 %v2246_v35 }
 0x471   :  { %1125 = vmatpush.msra.mxu1 %v2249_v36 }
 0x472   :  { %1192 = vmatpush.msrb.mxu2 %v2252_v37  ;;  %1212 = vmatpush.msrb.mxu3 %v2255_v38 }
 0x473   :  { %1126 = vmatpush.msra.mxu1 %v2258_v41 }
 0x474   :  { %1193 = vmatpush.msrb.mxu2 %v2534_v9  ;;  %1213 = vmatpush.msrb.mxu3 %v2544_v60 }
 0x475   :  { %1127 = vmatpush.msra.mxu1 %v2545_v43 }
 0x476   :  { %1194 = vmatpush.msrb.mxu2 %v2546_v30  ;;  %1214 = vmatpush.msrb.mxu3 %v2547_v10 }
 0x477   :  { %1128 = vmatpush.msra.mxu1 %v2548_v20 }
 0x478   :  { %1195 = vmatpush.msrb.mxu2 %v2549_v54  ;;  %1215 = vmatpush.msrb.mxu3 %v2550_v23 }
 0x4d5   :  { %v876_v14 = vpop.f32.mrf.mxu1 }
 0x4d6   :  { %v919_v26 = vadd.f32 %v876_v14, %v2551_v28 }
 0x4d8   :  { %v1340_v32 = vmul.f32 -1.442695, %v919_v26 }
 0x4da   :  { %1418 = vpow2.f32 %v1340_v32 }
 0x4db   :  { %v896_v63 = vpop.f32.mrf.mxu2 }
 0x4dc   :  { %v939_v18 = vadd.f32 %v896_v63, %v2552_v48  ;;  %v916_v16 = vpop.f32.mrf.mxu3 }
 0x4dd   :  { %v959_v55 = vadd.f32 %v2345_v0, %v916_v16 }
 0x4de   :  { %v1341_v13 = vmul.f32 -1.442695, %v939_v18 }
 0x4e0   :  { %v1419_v15 = vpop.eup %1418  ;;  %1420 = vpow2.f32 %v1341_v13 }
 0x4e1   :  { %v923_v19 = vadd.f32 1.0, %v1419_v15 }
 0x4e3   :  { %1422 = vrcp.f32 %v923_v19  ;;  %v935_v34 = vand.u32 2147483648, %v923_v19  ;;  %v933_v37 = vand.u32 2147483647, %v923_v19  ;;  %vm929_vm2 = vweird.f32 %v923_v19 }
 0x4e5   :  { %v936_v44 = vor.u32 1.1754944e-38, %v935_v34  ;;  %vm934_vm4 = vcmp.eq.f32.partialorder %v933_v37, 8.507059e+37 }
 0x4e6   :  { %v1421_v21 = vpop.eup %1420 }
 0x4e7   :  { %v943_v24 = vadd.f32 1.0, %v1421_v21 }
 0x4e9   :  { %v1423_v25 = vpop.eup %1422  ;;  %1424 = vrcp.f32 %v943_v24  ;;  %v955_v11 = vand.u32 2147483648, %v943_v24  ;;  %vm949_vm6 = vweird.f32 %v943_v24  ;;  %v953_v2 = vand.u32 2147483647, %v943_v24 }
 0x4ea   :  { %v925_v29 = vmul.f32 %v1423_v25, %v923_v19  ;;  %vm930_vm1 = vweird.f32 %v1423_v25 }
 0x4eb   :  { %vm931_vm3 = vmor %vm929_vm2, %vm930_vm1  ;;  %v956_v49 = vor.u32 1.1754944e-38, %v955_v11  ;;  %vm954_vm8 = vcmp.eq.f32.partialorder %v953_v2, 8.507059e+37 }
 0x4ec   :  { %v926_v31 = vsub.f32 1.0, %v925_v29 }
 0x4ee   :  { %v927_v35 = vmul.f32 %v1423_v25, %v926_v31 }
 0x4ef   :  { %v1425_v38 = vpop.eup %1424 }
 0x4f0   :  { %v945_v9 = vmul.f32 %v1425_v38, %v943_v24  ;;  %v928_v59 = vadd.f32 %v1423_v25, %v927_v35  ;;  %vm950_vm5 = vweird.f32 %v1425_v38 }
 0x4f1   :  { %vm951_vm7 = vmor %vm949_vm6, %vm950_vm5 }
 0x4f2   :  { %v946_v5 = vsub.f32 1.0, %v945_v9  ;;  %v932_v7 = vsel %vm931_vm3, %v1423_v25, %v928_v59 }
 0x4f3   :  { %v937_v50 = vsel %vm934_vm4, %v936_v44, %v932_v7 }
 0x4f4   :  { %v960_v8 = vmul.f32 %v959_v55, %v937_v50  ;;  %v947_v52 = vmul.f32 %v1425_v38, %v946_v5 }
 0x4f6   :  { %v961_v39 = vadd.f32 %v960_v8, %v1959_v42  ;;  %v948_v51 = vadd.f32 %v1425_v38, %v947_v52 }
 0x4f8   :  { %1426 = vtanh.f32 %v961_v39  ;;  %v952_v47 = vsel %vm951_vm7, %v1425_v38, %v948_v51 }
 0x4f9   :  { %v957_v3 = vsel %vm954_vm8, %v956_v49, %v952_v47 }
 0x4fe   :  { %v1427_v53 = vpop.eup %1426 }
 0x4ff   :  { %v963_v1 = vsub.f32 %v2350_v6, %v1427_v53 }
 0x501   :  { %v964_v40 = vmul.f32 %v963_v1, %v957_v3 }
 0x503   :  { %v2408_v4 = vadd.f32 %v1427_v53, %v964_v40 }
 0x505   :  { %982 = vmatmul.f32.vlgmr.msrb.gmra.mxu0 %v2408_v4  ;;  %1002 = vmatmul.f32.vlgmr.msrb.gmra.mxu1 %v2408_v4 }
 0x506   :  { %1022 = vmatmul.f32.vlgmr.msra.gmra.mxu2 %v2408_v4  ;;  %1220 = vmatpush.msrb.mxu0 %v2163_v45 }
 0x508   :  { %1221 = vmatpush.msrb.mxu0 %v2168_v57 }
 0x50a   :  { %1222 = vmatpush.msrb.mxu0 %v2173_v56 }
 0x50c   :  { %1223 = vmatpush.msrb.mxu0 %v2178_v62 }
 0x50e   :  { %1224 = vmatpush.msrb.mxu0 %v2183_v12 }
 0x510   :  { %1225 = vmatpush.msrb.mxu0 %v2188_v61 }
 0x512   :  { %1226 = vmatpush.msrb.mxu0 %v2195_v46 }
 0x514   :  { %1227 = vmatpush.msrb.mxu0 %v2204_v58 }
 0x516   :  { %1228 = vmatpush.msrb.mxu0 %v2213_v17 }
 0x518   :  { %1229 = vmatpush.msrb.mxu0 %v2222_v22 }
 0x51a   :  { %1230 = vmatpush.msrb.mxu0 %v2231_v27 }
 0x51c   :  { %1231 = vmatpush.msrb.mxu0 %v2240_v33 }
 0x51e   :  { %1232 = vmatpush.msrb.mxu0 %v2249_v36 }
 0x520   :  { %1233 = vmatpush.msrb.mxu0 %v2258_v41 }
 0x522   :  { %1234 = vmatpush.msrb.mxu0 %v2545_v43 }
 0x524   :  { %1235 = vmatpush.msrb.mxu0 %v2548_v20 }
 0x582   :  { %v983_v45 = vpop.f32.mrf.mxu0  ;;  %v1003_v57 = vpop.f32.mrf.mxu1 }
 0x583   :  { %v1026_v56 = vadd.f32 %v983_v45, %v2551_v28  ;;  %v1046_v62 = vadd.f32 %v1003_v57, %v2552_v48 }
 0x585   :  { %v1342_v12 = vmul.f32 -1.442695, %v1026_v56  ;;  %v1343_v61 = vmul.f32 -1.442695, %v1046_v62 }
 0x587   :  { %1428 = vpow2.f32 %v1342_v12 }
 0x588   :  { %1430 = vpow2.f32 %v1343_v61 }
 0x589   :  { %v1023_v10 = vpop.f32.mrf.mxu2 }
 0x58a   :  { %v1066_v26 = vadd.f32 %v2345_v0, %v1023_v10 }
 0x58d   :  { %v1429_v46 = vpop.eup %1428 }
 0x58e   :  { %v1431_v58 = vpop.eup %1430  ;;  %v1030_v17 = vadd.f32 1.0, %v1429_v46 }
 0x58f   :  { %v1050_v22 = vadd.f32 1.0, %v1431_v58 }
 0x590   :  { %1432 = vrcp.f32 %v1030_v17  ;;  %v1042_v60 = vand.u32 2147483648, %v1030_v17  ;;  %v1040_v30 = vand.u32 2147483647, %v1030_v17  ;;  %vm1036_vm10 = vweird.f32 %v1030_v17 }
 0x591   :  { %1434 = vrcp.f32 %v1050_v22  ;;  %v1062_v19 = vand.u32 2147483648, %v1050_v22  ;;  %vm1056_vm14 = vweird.f32 %v1050_v22  ;;  %v1060_v21 = vand.u32 2147483647, %v1050_v22 }
 0x592   :  { %v1043_v23 = vor.u32 1.1754944e-38, %v1042_v60  ;;  %vm1041_vm12 = vcmp.eq.f32.partialorder %v1040_v30, 8.507059e+37 }
 0x593   :  { %v1063_v29 = vor.u32 1.1754944e-38, %v1062_v19  ;;  %vm1061_vm0 = vcmp.eq.f32.partialorder %v1060_v21, 8.507059e+37 }
 0x596   :  { %v1433_v27 = vpop.eup %1432 }
 0x597   :  { %v1435_v33 = vpop.eup %1434  ;;  %v1032_v36 = vmul.f32 %v1433_v27, %v1030_v17  ;;  %vm1037_vm9 = vweird.f32 %v1433_v27 }
 0x598   :  { %v1052_v6 = vmul.f32 %v1435_v33, %v1050_v22  ;;  %vm1038_vm11 = vmor %vm1036_vm10, %vm1037_vm9  ;;  %vm1057_vm13 = vweird.f32 %v1435_v33 }
 0x599   :  { %v1033_v41 = vsub.f32 1.0, %v1032_v36  ;;  %vm1058_vm15 = vmor %vm1056_vm14, %vm1057_vm13 }
 0x59a   :  { %v1053_v54 = vsub.f32 1.0, %v1052_v6 }
 0x59b   :  { %v1034_v43 = vmul.f32 %v1433_v27, %v1033_v41 }
 0x59c   :  { %v1054_v18 = vmul.f32 %v1435_v33, %v1053_v54 }
 0x59d   :  { %v1035_v20 = vadd.f32 %v1433_v27, %v1034_v43 }
 0x59e   :  { %v1055_v15 = vadd.f32 %v1435_v33, %v1054_v18 }
 0x59f   :  { %v1039_v14 = vsel %vm1038_vm11, %v1433_v27, %v1035_v20 }
 0x5a0   :  { %v1044_v32 = vsel %vm1041_vm12, %v1043_v23, %v1039_v14  ;;  %v1059_v24 = vsel %vm1058_vm15, %v1435_v33, %v1055_v15 }
 0x5a1   :  { %v1067_v63 = vmul.f32 %v1066_v26, %v1044_v32  ;;  %v1064_v34 = vsel %vm1061_vm0, %v1063_v29, %v1059_v24 }
 0x5a3   :  { %v1068_v13 = vadd.f32 %v1067_v63, %v1959_v42 }
 0x5a5   :  { %1436 = vtanh.f32 %v1068_v13 }
 0x5ab   :  { %v1437_v25 = vpop.eup %1436 }
 0x5ac   :  { %v1070_v31 = vsub.f32 %v2408_v4, %v1437_v25 }
 0x5ae   :  { %v1071_v35 = vmul.f32 %v1070_v31, %v1064_v34 }
 0x5b0   :  { %v1072_v37 = vadd.f32 %v1437_v25, %v1071_v35 }
 0x5b2   :  { %1089 = vmatmul.f32.vlgmr.msra.gmra.mxu3 %v1072_v37  ;;  %1109 = vmatmul.f32.vlgmr.msra.gmra.mxu0 %v1072_v37 }
 0x5b3   :  { %1129 = vmatmul.f32.vlgmr.msra.gmra.mxu1 %v1072_v37 }
 0x62f   :  { %v1110_v38 = vpop.f32.mrf.mxu0 }
 0x630   :  { %v1153_v16 = vadd.f32 %v1110_v38, %v2552_v48  ;;  %v1130_v1 = vpop.f32.mrf.mxu1 }
 0x631   :  { %v1173_v45 = vadd.f32 %v2345_v0, %v1130_v1 }
 0x632   :  { %v1345_v9 = vmul.f32 -1.442695, %v1153_v16 }
 0x634   :  { %1438 = vpow2.f32 %v1345_v9 }
 0x635   :  { %v1090_v59 = vpop.f32.mrf.mxu3 }
 0x636   :  { %v1133_v44 = vadd.f32 %v1090_v59, %v2551_v28 }
 0x638   :  { %v1344_v5 = vmul.f32 -1.442695, %v1133_v44 }
 0x63a   :  { %1440 = vpow2.f32 %v1344_v5  ;;  %v1439_v7 = vpop.eup %1438 }
 0x63b   :  { %v1157_v50 = vadd.f32 1.0, %v1439_v7 }
 0x63d   :  { %v1169_v58 = vand.u32 2147483648, %v1157_v50  ;;  %vm1163_vm6 = vweird.f32 %v1157_v50  ;;  %v1167_v17 = vand.u32 2147483647, %v1157_v50 }
 0x63f   :  { %v1170_v33 = vor.u32 1.1754944e-38, %v1169_v58  ;;  %vm1168_vm8 = vcmp.eq.f32.partialorder %v1167_v17, 8.507059e+37 }
 0x640   :  { %v1441_v55 = vpop.eup %1440 }
 0x641   :  { %v1137_v8 = vadd.f32 1.0, %v1441_v55 }
 0x643   :  { %1442 = vrcp.f32 %v1137_v8  ;;  %v1149_v47 = vand.u32 2147483648, %v1137_v8  ;;  %v1147_v49 = vand.u32 2147483647, %v1137_v8  ;;  %vm1143_vm2 = vweird.f32 %v1137_v8 }
 0x644   :  { %1444 = vrcp.f32 %v1157_v50 }
 0x645   :  { %v1150_v4 = vor.u32 1.1754944e-38, %v1149_v47  ;;  %vm1148_vm4 = vcmp.eq.f32.partialorder %v1147_v49, 8.507059e+37 }
 0x649   :  { %v1443_v52 = vpop.eup %1442 }
 0x64a   :  { %v1445_v39 = vpop.eup %1444  ;;  %v1139_v51 = vmul.f32 %v1443_v52, %v1137_v8  ;;  %vm1144_vm1 = vweird.f32 %v1443_v52 }
 0x64b   :  { %v1159_v2 = vmul.f32 %v1445_v39, %v1157_v50  ;;  %vm1145_vm3 = vmor %vm1143_vm2, %vm1144_vm1  ;;  %vm1164_vm5 = vweird.f32 %v1445_v39 }
 0x64c   :  { %v1140_v11 = vsub.f32 1.0, %v1139_v51  ;;  %vm1165_vm7 = vmor %vm1163_vm6, %vm1164_vm5  ;;  %v1357_v51 = vld [vmem:[%s2456_s5] ss:$0 sm:$0xff] }
 0x64d   :  { %v1160_v40 = vsub.f32 1.0, %v1159_v2  ;;  %v1295_v2 = vstv %s2457_s6 }
 0x64e   :  { %v1141_v53 = vmul.f32 %v1443_v52, %v1140_v11 }
 0x64f   :  { %v1161_v12 = vmul.f32 %v1445_v39, %v1160_v40 }
 0x650   :  { %v1142_v3 = vadd.f32 %v1443_v52, %v1141_v53 }
 0x651   :  { %v1162_v46 = vadd.f32 %v1445_v39, %v1161_v12 }
 0x652   :  { %v1146_v57 = vsel %vm1145_vm3, %v1443_v52, %v1142_v3 }
 0x653   :  { %v1151_v56 = vsel %vm1148_vm4, %v1150_v4, %v1146_v57  ;;  %v1166_v22 = vsel %vm1165_vm7, %v1445_v39, %v1162_v46  ;;  %vm1316_vm4 = vcmask 7168  }
 0x654   :  { %v1174_v62 = vmul.f32 %v1173_v45, %v1151_v56  ;;  %v1171_v41 = vsel %vm1168_vm8, %v1170_v33, %v1166_v22 }
 0x656   :  { %v1175_v61 = vadd.f32 %v1174_v62, %v1959_v42 }
 0x658   :  { %1446 = vtanh.f32 %v1175_v61 }
 0x65e   :  { %v1447_v27 = vpop.eup %1446 }
 0x65f   :  { %v1177_v36 = vsub.f32 %v1072_v37, %v1447_v27 }
 0x661   :  { %v1178_v6 = vmul.f32 %v1177_v36, %v1171_v41 }
 0x663   :  { %v1179_v60 = vadd.f32 %v1447_v27, %v1178_v6 }
 0x665   :  { %1196 = vmatmul.f32.vlgmr.msrb.gmra.mxu2 %v1179_v60  ;;  %1216 = vmatmul.f32.vlgmr.msrb.gmra.mxu3 %v1179_v60 }
 0x666   :  { %1236 = vmatmul.f32.vlgmr.msrb.gmra.mxu0 %v1179_v60 }
 0x6e8   :  { %v1197_v43 = vpop.f32.mrf.mxu2  ;;  %v1217_v30 = vpop.f32.mrf.mxu3 }
 0x6e9   :  { %v1240_v10 = vadd.f32 %v1197_v43, %v2551_v28  ;;  %v1260_v20 = vadd.f32 %v1217_v30, %v2552_v48  ;;  %v1237_v48 = vpop.f32.mrf.mxu0 }
 0x6ea   :  { %v1280_v35 = vadd.f32 %v2345_v0, %v1237_v48 }
 0x6eb   :  { %v1346_v54 = vmul.f32 -1.442695, %v1240_v10  ;;  %v1347_v23 = vmul.f32 -1.442695, %v1260_v20 }
 0x6ed   :  { %1448 = vpow2.f32 %v1346_v54 }
 0x6ee   :  { %1450 = vpow2.f32 %v1347_v23 }
 0x6f3   :  { %v1449_v14 = vpop.eup %1448 }
 0x6f4   :  { %v1451_v26 = vpop.eup %1450  ;;  %v1244_v32 = vadd.f32 1.0, %v1449_v14 }
 0x6f5   :  { %v1264_v63 = vadd.f32 1.0, %v1451_v26 }
 0x6f6   :  { %1452 = vrcp.f32 %v1244_v32  ;;  %v1256_v21 = vand.u32 2147483648, %v1244_v32  ;;  %v1254_v28 = vand.u32 2147483647, %v1244_v32  ;;  %vm1250_vm10 = vweird.f32 %v1244_v32 }
 0x6f7   :  { %1454 = vrcp.f32 %v1264_v63  ;;  %v1276_v5 = vand.u32 2147483648, %v1264_v63  ;;  %vm1270_vm14 = vweird.f32 %v1264_v63  ;;  %v1274_v7 = vand.u32 2147483647, %v1264_v63 }
 0x6f8   :  { %v1257_v31 = vor.u32 1.1754944e-38, %v1256_v21  ;;  %vm1255_vm12 = vcmp.eq.f32.partialorder %v1254_v28, 8.507059e+37 }
 0x6f9   :  { %v1277_v8 = vor.u32 1.1754944e-38, %v1276_v5  ;;  %vm1275_vm0 = vcmp.eq.f32.partialorder %v1274_v7, 8.507059e+37 }
 0x6fc   :  { %v1453_v18 = vpop.eup %1452 }
 0x6fd   :  { %v1455_v13 = vpop.eup %1454  ;;  %v1246_v15 = vmul.f32 %v1453_v18, %v1244_v32  ;;  %vm1251_vm9 = vweird.f32 %v1453_v18 }
 0x6fe   :  { %v1266_v24 = vmul.f32 %v1455_v13, %v1264_v63  ;;  %vm1252_vm11 = vmor %vm1250_vm10, %vm1251_vm9  ;;  %vm1271_vm13 = vweird.f32 %v1455_v13 }
 0x6ff   :  { %v1247_v19 = vsub.f32 1.0, %v1246_v15  ;;  %vm1272_vm15 = vmor %vm1270_vm14, %vm1271_vm13 }
 0x700   :  { %v1267_v34 = vsub.f32 1.0, %v1266_v24 }
 0x701   :  { %v1248_v25 = vmul.f32 %v1453_v18, %v1247_v19 }
 0x702   :  { %v1268_v9 = vmul.f32 %v1455_v13, %v1267_v34 }
 0x703   :  { %v1249_v29 = vadd.f32 %v1453_v18, %v1248_v25 }
 0x704   :  { %v1269_v44 = vadd.f32 %v1455_v13, %v1268_v9 }
 0x705   :  { %v1253_v37 = vsel %vm1252_vm11, %v1453_v18, %v1249_v29 }
 0x706   :  { %v1258_v38 = vsel %vm1255_vm12, %v1257_v31, %v1253_v37  ;;  %v1273_v55 = vsel %vm1272_vm15, %v1455_v13, %v1269_v44 }
 0x707   :  { %v1281_v16 = vmul.f32 %v1280_v35, %v1258_v38  ;;  %v1278_v0 = vsel %vm1275_vm0, %v1277_v8, %v1273_v55 }
 0x709   :  { %v1282_v59 = vadd.f32 %v1281_v16, %v1959_v42 }
 0x70b   :  { %1456 = vtanh.f32 %v1282_v59 }
 0x711   :  { %v1457_v50 = vpop.eup %1456 }
 0x712   :  { %v1284_v52 = vsub.f32 %v1179_v60, %v1457_v50 }
 0x714   :  { %v1285_v39 = vmul.f32 %v1284_v52, %v1278_v0 }
 0x716   :  { %v1286_v11 = vadd.f32 %v1457_v50, %v1285_v39 }
 0x718   :  { %v1291_v42 = vmul.f32 %v1357_v51, %v1286_v11 }
 0x71a   :  { %1292 = vadd.xlane.f32.xlu0 %v1291_v42 }
 0x78d   :  { %v1293_v47 = vpop.xlane.xlu0 %1292 }
 0x78e   :  { %v1296_v53 = vadd.f32 %v1295_v2, %v1293_v47 }
 0x790   :  { %v1348_v49 = vmul.f32 -1.442695, %v1296_v53 }
 0x792   :  { %1458 = vpow2.f32 %v1348_v49 }
 0x798   :  { %v1459_v1 = vpop.eup %1458 }
 0x799   :  { %v1300_v3 = vadd.f32 1.0, %v1459_v1 }
 0x79b   :  { %1460 = vrcp.f32 %v1300_v3  ;;  %v1312_v57 = vand.u32 2147483648, %v1300_v3  ;;  %v1310_v62 = vand.u32 2147483647, %v1300_v3  ;;  %vm1306_vm2 = vweird.f32 %v1300_v3 }
 0x79d   :  { %v1313_v61 = vor.u32 1.1754944e-38, %v1312_v57  ;;  %vm1311_vm5 = vcmp.eq.f32.partialorder %v1310_v62, 8.507059e+37 }
 0x7a1   :  { %v1461_v40 = vpop.eup %1460 }
 0x7a2   :  { %v1302_v4 = vmul.f32 %v1461_v40, %v1300_v3  ;;  %vm1307_vm1 = vweird.f32 %v1461_v40 }
 0x7a3   :  { %vm1308_vm3 = vmor %vm1306_vm2, %vm1307_vm1 }
 0x7a4   :  { %v1303_v45 = vsub.f32 1.0, %v1302_v4 }
 0x7a6   :  { %v1304_v56 = vmul.f32 %v1461_v40, %v1303_v45 }
 0x7a8   :  { %v1305_v12 = vadd.f32 %v1461_v40, %v1304_v56 }
 0x7aa   :  { %v1309_v46 = vsel %vm1308_vm3, %v1461_v40, %v1305_v12 }
 0x7ab   :  { %v1314_v58 = vsel %vm1311_vm5, %v1313_v61, %v1309_v46 }
 0x7ac   :  { %1317 = vst.msk [vmem:[%s2458_s7] sm:$0xff] %vm1316_vm4, %v1314_v58 }
 0x7ad   :  { %1322 = vsyncpa [#allocation4], 1 }
 0x7ae   :  { %1323 = vsyncpa [#allocation6], 1 }
 0x7af   :  { %1324 = vsyncpa [#allocation9], 1 }

</bundles_post_ra>
